<compile_context>
chip_gen: v7x
topology: tpu7x:2x2x1
jax: 0.10.0
libtpu: 0.0.40
codegen_flags: <defaults>
</compile_context>

<pallas_src>
import functools

import jax
import jax.numpy as jnp
import numpy as np
from jax import lax
from jax.experimental import pallas as pl
from jax.experimental.pallas import tpu as pltpu

EMBED = 128   # original module: embed_size = 300
LANES = 128


def fused_bigru_kernel(x2_ref, wih_ref, bih_ref, whh_ref, bhn_ref, pool_ref,
                       wf_ref, bf_ref, tgt_ref,
                       doc_ref, rating_ref, loss_ref,
                       gi_ref, hs_ref, *, S, B, E):
    B2 = 2 * B
    E3 = 3 * E

    # ---- hoisted input projection: one bf16 MXU matmul (f32 accumulation) for
    # both directions and all timesteps; r/z biases pre-folded in the wrapper.
    # x2 rows [t*2B : t*2B+B)     = x[t]       (forward direction)
    #         [t*2B+B : (t+1)*2B) = x[S-1-t]   (backward direction)
    gi6 = (jnp.dot(x2_ref[...], wih_ref[...],
                   preferred_element_type=jnp.float32)
           + bih_ref[...])                                        # (S*2B, 6E) f32

    # Direction select applied ONCE (independent of h): rows whose index mod 2B
    # is < B are forward-direction rows and consume the first 3E columns.
    row_big = lax.broadcasted_iota(jnp.int32, (S * B2, E3), 0)
    if (B2 & (B2 - 1)) == 0:
        row_in_blk = jnp.bitwise_and(row_big, B2 - 1)
    else:
        row_in_blk = lax.rem(row_big, B2)
    fwd_big = row_in_blk < B
    gi_ref[...] = jnp.where(fwd_big, gi6[:, :E3], gi6[:, E3:])    # (S*2B, 3E)

    # Small per-tile constants kept live across the loop (few vregs only).
    fwd_row_3e = lax.broadcasted_iota(jnp.int32, (B2, E3), 0) < B
    bhn = bhn_ref[...]                                            # (2B, E) f32

    h = jnp.zeros((B2, E), jnp.float32)
    for t in range(S):               # S is small & static: fully unrolled
        gi_t = gi_ref[t * B2:(t + 1) * B2, :]                     # (2B, 3E) f32

        if t == 0:
            gh = jnp.zeros((B2, E3), jnp.float32)                 # h == 0
        else:
            # Recurrent matmul on the serial chain: bf16 operands, f32 acc.
            # RHS is read from VMEM inside the loop (streamed, not held in
            # vregs); single (2B, 3E) select picks this row's direction.
            gh6 = jnp.dot(h.astype(jnp.bfloat16), whh_ref[...],
                          preferred_element_type=jnp.float32)     # (2B, 6E)
            gh = jnp.where(fwd_row_3e, gh6[:, :E3], gh6[:, E3:])  # (2B, 3E)

        r = jax.nn.sigmoid(gi_t[:, 0:E] + gh[:, 0:E])
        z = jax.nn.sigmoid(gi_t[:, E:2 * E] + gh[:, E:2 * E])
        n = jnp.tanh(gi_t[:, 2 * E:] + r * (gh[:, 2 * E:] + bhn))
        h = (1.0 - z) * n + z * h
        hs_ref[t * B2:(t + 1) * B2, :] = h                        # stage in VMEM

    # ---- batch-mean pooling (== F.avg_pool2d(out, (B, 1))) + bidirectional
    # time re-alignment as one small matmul fed from the hidden-state scratch.
    doc2 = jnp.dot(pool_ref[...], hs_ref[...],
                   preferred_element_type=jnp.float32)            # (2S, E)
    doc = jnp.concatenate([doc2[:S, :], doc2[S:, :]], axis=-1)    # (S, 2E)
    doc_ref[...] = doc

    # ---- final Linear(2E, 1): VPU multiply + lane reduce (no N=1 MXU matmul)
    rating = jnp.sum(doc * wf_ref[...], axis=-1, keepdims=True) + bf_ref[...]
    rating_slab = jnp.broadcast_to(rating, rating_ref.shape)      # lane-dense
    rating_ref[...] = rating_slab

    # ---- mean-reduced MSE (target pre-broadcast over lanes; mean unchanged)
    diff = rating_slab - tgt_ref[...]
    loss = jnp.mean(diff * diff)
    loss_ref[...] = jnp.broadcast_to(jnp.reshape(loss, (1, 1)), loss_ref.shape)


class RNNPallas:
    """Pallas port of the PyTorch RNN module (bidirectional GRU + head)."""

    def __init__(self, key, embed=EMBED):
        E = embed
        self.E = E
        k = E ** -0.5
        keys = jax.random.split(key, 10)

        def u(kk, shape, scale):
            return jax.random.uniform(kk, shape, jnp.float32, -scale, scale)

        wih_t, whh_t, b_hoist, b_hn = [], [], [], []
        for i in range(2):                       # 0: forward, 1: backward
            w_ih = u(keys[4 * i + 0], (3 * E, E), k)   # PyTorch layout (3E, E)
            w_hh = u(keys[4 * i + 1], (3 * E, E), k)
            b_ih = u(keys[4 * i + 2], (3 * E,), k)
            b_hh = u(keys[4 * i + 3], (3 * E,), k)
            wih_t.append(jnp.transpose(w_ih))          # (E, 3E)
            whh_t.append(jnp.transpose(w_hh))          # (E, 3E)
            # fold b_ih + b_hh for r/z; keep b_ih_n alone (b_hh_n stays in r*(.))
            b_hoist.append(jnp.concatenate([b_ih[:2 * E] + b_hh[:2 * E],
                                            b_ih[2 * E:]]))
            b_hn.append(b_hh[2 * E:])

        # MXU operands are fed as bf16 (f32 accumulation inside the kernel).
        # Biases / gate math / head stay f32.
        self.wih_both = jnp.concatenate(wih_t, axis=1).astype(jnp.bfloat16)  # (E, 6E)
        self.whh_both = jnp.concatenate(whh_t, axis=1).astype(jnp.bfloat16)  # (E, 6E)
        self.bias_both = jnp.concatenate(b_hoist).reshape(1, 6 * E)          # f32
        self.b_hn = jnp.stack(b_hn, axis=0)                                  # (2, E)

        kf = (2 * E) ** -0.5
        self.final_w = u(keys[8], (1, 2 * E), kf)                  # (1, 2E)
        self.final_b = u(keys[9], (1,), kf).reshape(1, 1)

    def main_task(self, x, target):
        S, B, E = x.shape
        assert E == self.E
        B2 = 2 * B

        # Stack fwd input and time-reversed bwd input along the batch axis so
        # every timestep block is a full (2B, E) tile; cast to bf16 for the MXU.
        x2 = (jnp.concatenate([x, x[::-1]], axis=1)
              .reshape(S * B2, E).astype(jnp.bfloat16))

        # Per-row b_hh_n for the stacked (2B, E) hidden-state tile.
        bhn_stack = jnp.concatenate(
            [jnp.broadcast_to(self.b_hn[0:1, :], (B, E)),
             jnp.broadcast_to(self.b_hn[1:2, :], (B, E))], axis=0)  # (2B, E)

        # Constant pooling matrix: row s     -> mean of fwd rows at step s
        #                          row S + s -> mean of bwd rows at step S-1-s
        pool = np.zeros((2 * S, S * B2), np.float32)
        for s in range(S):
            pool[s, s * B2: s * B2 + B] = 1.0 / B
            tb = S - 1 - s
            pool[S + s, tb * B2 + B: (tb + 1) * B2] = 1.0 / B
        pool = jnp.asarray(pool)

        tgt_slab = jnp.broadcast_to(target.reshape(S, 1), (S, LANES))

        vmem = pl.BlockSpec(memory_space=pltpu.MemorySpace.VMEM)
        doc, rating_slab, loss_slab = pl.pallas_call(
            functools.partial(fused_bigru_kernel, S=S, B=B, E=E),
            out_shape=(
                jax.ShapeDtypeStruct((S, 2 * E), jnp.float32),   # doc
                jax.ShapeDtypeStruct((S, LANES), jnp.float32),   # rating slab
                jax.ShapeDtypeStruct((8, LANES), jnp.float32),   # loss slab
            ),
            in_specs=[vmem] * 9,
            out_specs=(vmem, vmem, vmem),
            scratch_shapes=[
                pltpu.VMEM((S * B2, 3 * E), jnp.float32),  # selected gi, all steps
                pltpu.VMEM((S * B2, E), jnp.float32),      # per-step hidden states
            ],
        )(x2, self.wih_both, self.bias_both, self.whh_both, bhn_stack, pool,
          self.final_w, self.final_b, tgt_slab)

        rating = rating_slab[:, 0:1]          # (S, 1)
        loss = loss_slab[0, 0]                # scalar MSE
        return doc, rating, loss

    def __call__(self, x_, mode="train"):
        x = x_[0]
        if mode == "train":
            target = x_[1]
        else:
            # loss is computed but discarded in eval (matches module semantics)
            target = jnp.zeros((x.shape[0], 1), jnp.float32)
        doc, rating, loss = self.main_task(x, target)
        if mode == "train":
            return loss                                   # scalar MSE loss
        return rating.reshape(rating.shape[0])            # (S,)


if __name__ == "__main__":
    key = jax.random.PRNGKey(0)
    k_param, k_x, k_t = jax.random.split(key, 3)

    S, B, E = 8, 4, EMBED
    model = RNNPallas(k_param, embed=E)

    x = jax.random.normal(k_x, (S, B, E), dtype=jnp.float32)
    target = jax.random.normal(k_t, (S, 1), dtype=jnp.float32)

    loss = jax.block_until_ready(model((x, target), mode="train"))
    rating = jax.block_until_ready(model((x, target), mode="eval"))

    assert loss.shape == () and rating.shape == (S,)
    assert bool(jnp.isfinite(loss)) and bool(jnp.all(jnp.isfinite(rating)))
    print("KERNEL_OK")
</pallas_src>

<mosaic_0001>
module attributes {stable_mosaic.version = 11 : i64} {
  func.func @fused_bigru_kernel(%arg0: memref<64x128xbf16, #tpu.memory_space<vmem>>, %arg1: memref<128x768xbf16, #tpu.memory_space<vmem>>, %arg2: memref<1x768xf32, #tpu.memory_space<vmem>>, %arg3: memref<128x768xbf16, #tpu.memory_space<vmem>>, %arg4: memref<8x128xf32, #tpu.memory_space<vmem>>, %arg5: memref<16x64xf32, #tpu.memory_space<vmem>>, %arg6: memref<1x256xf32, #tpu.memory_space<vmem>>, %arg7: memref<1x1xf32, #tpu.memory_space<vmem>>, %arg8: memref<8x128xf32, #tpu.memory_space<vmem>>, %arg9: memref<8x256xf32, #tpu.memory_space<vmem>>, %arg10: memref<8x128xf32, #tpu.memory_space<vmem>>, %arg11: memref<8x128xf32, #tpu.memory_space<vmem>>, %arg12: memref<64x384xf32, #tpu.memory_space<vmem>>, %arg13: memref<64x128xf32, #tpu.memory_space<vmem>>) attributes {dimension_semantics = [], scalar_prefetch = 0 : i64, scratch_operands = 2 : i64, tpu.core_type = #tpu.core_type<tc>} {
    %c0 = arith.constant 0 : index
    %c0_0 = arith.constant 0 : index
    %0 = vector.load %arg0[%c0, %c0_0] : memref<64x128xbf16, #tpu.memory_space<vmem>>, vector<64x128xbf16>
    %c0_1 = arith.constant 0 : index
    %c0_2 = arith.constant 0 : index
    %1 = vector.load %arg1[%c0_1, %c0_2] : memref<128x768xbf16, #tpu.memory_space<vmem>>, vector<128x768xbf16>
    %cst = arith.constant dense<0.000000e+00> : vector<64x768xf32>
    %2 = tpu.matmul %0, %1, %cst {dimension_numbers = #tpu.dot_dimension_numbers<[1], [0], [0], [1], [0, 0, 1, 1], [], []>} : vector<64x128xbf16>, vector<128x768xbf16>, vector<64x768xf32> -> vector<64x768xf32>
    %c0_3 = arith.constant 0 : index
    %c0_4 = arith.constant 0 : index
    %3 = vector.load %arg2[%c0_3, %c0_4] : memref<1x768xf32, #tpu.memory_space<vmem>>, vector<1x768xf32>
    %4 = vector.broadcast %3 : vector<1x768xf32> to vector<64x768xf32>
    %5 = arith.addf %2, %4 : vector<64x768xf32>
    %6 = tpu.iota {dimensions = array<i32: 0>} : vector<64x384xi32>
    %c7_i32 = arith.constant 7 : i32
    %7 = vector.broadcast %c7_i32 : i32 to vector<64x384xi32>
    %8 = arith.andi %6, %7 : vector<64x384xi32>
    %c4_i32 = arith.constant 4 : i32
    %9 = vector.broadcast %c4_i32 : i32 to vector<64x384xi32>
    %10 = arith.cmpi slt, %8, %9 : vector<64x384xi32>
    %11 = vector.extract_strided_slice %5 {offsets = [0, 0], sizes = [64, 384], strides = [1, 1]} : vector<64x768xf32> to vector<64x384xf32>
    %12 = vector.extract_strided_slice %5 {offsets = [0, 384], sizes = [64, 384], strides = [1, 1]} : vector<64x768xf32> to vector<64x384xf32>
    %13 = arith.select %10, %11, %12 : vector<64x384xi1>, vector<64x384xf32>
    %c0_5 = arith.constant 0 : index
    %c0_6 = arith.constant 0 : index
    %14 = vector.load %arg12[%c0_5, %c0_6] : memref<64x384xf32, #tpu.memory_space<vmem>>, vector<64x384xf32>
    tpu.vector_store %arg12[%c0_5, %c0_6], %13 {strides = array<i32>} : memref<64x384xf32, #tpu.memory_space<vmem>>, vector<64x384xf32>,
    %15 = tpu.iota {dimensions = array<i32: 0>} : vector<8x384xi32>
    %c4_i32_7 = arith.constant 4 : i32
    %16 = vector.broadcast %c4_i32_7 : i32 to vector<8x384xi32>
    %17 = arith.cmpi slt, %15, %16 : vector<8x384xi32>
    %c0_8 = arith.constant 0 : index
    %c0_9 = arith.constant 0 : index
    %18 = vector.load %arg4[%c0_8, %c0_9] : memref<8x128xf32, #tpu.memory_space<vmem>>, vector<8x128xf32>
    %cst_10 = arith.constant 0.000000e+00 : f32
    %19 = vector.broadcast %cst_10 : f32 to vector<8x128xf32>
    %c0_11 = arith.constant 0 : index
    %c0_12 = arith.constant 0 : index
    %20 = vector.load %arg12[%c0_11, %c0_12] : memref<64x384xf32, #tpu.memory_space<vmem>>, vector<8x384xf32>
    %cst_13 = arith.constant 0.000000e+00 : f32
    %21 = vector.broadcast %cst_13 : f32 to vector<8x384xf32>
    %22 = vector.extract_strided_slice %20 {offsets = [0, 0], sizes = [8, 128], strides = [1, 1]} : vector<8x384xf32> to vector<8x128xf32>
    %23 = vector.extract_strided_slice %21 {offsets = [0, 0], sizes = [8, 128], strides = [1, 1]} : vector<8x384xf32> to vector<8x128xf32>
    %24 = arith.addf %22, %23 : vector<8x128xf32>
    %25 = arith.negf %24 : vector<8x128xf32>
    %26 = math.exp %25 : vector<8x128xf32>
    %cst_14 = arith.constant 1.000000e+00 : f32
    %27 = vector.broadcast %cst_14 : f32 to vector<8x128xf32>
    %28 = arith.addf %27, %26 : vector<8x128xf32>
    %29 = arith.divf %27, %28 : vector<8x128xf32>
    %30 = vector.extract_strided_slice %20 {offsets = [0, 128], sizes = [8, 128], strides = [1, 1]} : vector<8x384xf32> to vector<8x128xf32>
    %31 = vector.extract_strided_slice %21 {offsets = [0, 128], sizes = [8, 128], strides = [1, 1]} : vector<8x384xf32> to vector<8x128xf32>
    %32 = arith.addf %30, %31 : vector<8x128xf32>
    %33 = arith.negf %32 : vector<8x128xf32>
    %34 = math.exp %33 : vector<8x128xf32>
    %cst_15 = arith.constant 1.000000e+00 : f32
    %35 = vector.broadcast %cst_15 : f32 to vector<8x128xf32>
    %36 = arith.addf %35, %34 : vector<8x128xf32>
    %37 = arith.divf %35, %36 : vector<8x128xf32>
    %38 = vector.extract_strided_slice %20 {offsets = [0, 256], sizes = [8, 128], strides = [1, 1]} : vector<8x384xf32> to vector<8x128xf32>
    %39 = vector.extract_strided_slice %21 {offsets = [0, 256], sizes = [8, 128], strides = [1, 1]} : vector<8x384xf32> to vector<8x128xf32>
    %40 = arith.addf %39, %18 : vector<8x128xf32>
    %41 = arith.mulf %29, %40 : vector<8x128xf32>
    %42 = arith.addf %38, %41 : vector<8x128xf32>
    %43 = math.tanh %42 : vector<8x128xf32>
    %cst_16 = arith.constant 1.000000e+00 : f32
    %44 = vector.broadcast %cst_16 : f32 to vector<8x128xf32>
    %45 = arith.subf %44, %37 : vector<8x128xf32>
    %46 = arith.mulf %45, %43 : vector<8x128xf32>
    %47 = arith.mulf %37, %19 : vector<8x128xf32>
    %48 = arith.addf %46, %47 : vector<8x128xf32>
    %c0_17 = arith.constant 0 : index
    %c0_18 = arith.constant 0 : index
    %49 = vector.load %arg13[%c0_17, %c0_18] : memref<64x128xf32, #tpu.memory_space<vmem>>, vector<8x128xf32>
    tpu.vector_store %arg13[%c0_17, %c0_18], %48 {strides = array<i32>} : memref<64x128xf32, #tpu.memory_space<vmem>>, vector<8x128xf32>,
    %c8 = arith.constant 8 : index
    %c0_19 = arith.constant 0 : index
    %50 = vector.load %arg12[%c8, %c0_19] : memref<64x384xf32, #tpu.memory_space<vmem>>, vector<8x384xf32>
    %51 = arith.truncf %48 : vector<8x128xf32> to vector<8x128xbf16>
    %c0_20 = arith.constant 0 : index
    %c0_21 = arith.constant 0 : index
    %52 = vector.load %arg3[%c0_20, %c0_21] : memref<128x768xbf16, #tpu.memory_space<vmem>>, vector<128x768xbf16>
    %cst_22 = arith.constant dense<0.000000e+00> : vector<8x768xf32>
    %53 = tpu.matmul %51, %52, %cst_22 {dimension_numbers = #tpu.dot_dimension_numbers<[1], [0], [0], [1], [0, 0, 1, 1], [], []>} : vector<8x128xbf16>, vector<128x768xbf16>, vector<8x768xf32> -> vector<8x768xf32>
    %54 = vector.extract_strided_slice %53 {offsets = [0, 0], sizes = [8, 384], strides = [1, 1]} : vector<8x768xf32> to vector<8x384xf32>
    %55 = vector.extract_strided_slice %53 {offsets = [0, 384], sizes = [8, 384], strides = [1, 1]} : vector<8x768xf32> to vector<8x384xf32>
    %56 = arith.select %17, %54, %55 : vector<8x384xi1>, vector<8x384xf32>
    %57 = vector.extract_strided_slice %50 {offsets = [0, 0], sizes = [8, 128], strides = [1, 1]} : vector<8x384xf32> to vector<8x128xf32>
    %58 = vector.extract_strided_slice %56 {offsets = [0, 0], sizes = [8, 128], strides = [1, 1]} : vector<8x384xf32> to vector<8x128xf32>
    %59 = arith.addf %57, %58 : vector<8x128xf32>
    %60 = arith.negf %59 : vector<8x128xf32>
    %61 = math.exp %60 : vector<8x128xf32>
    %cst_23 = arith.constant 1.000000e+00 : f32
    %62 = vector.broadcast %cst_23 : f32 to vector<8x128xf32>
    %63 = arith.addf %62, %61 : vector<8x128xf32>
    %64 = arith.divf %62, %63 : vector<8x128xf32>
    %65 = vector.extract_strided_slice %50 {offsets = [0, 128], sizes = [8, 128], strides = [1, 1]} : vector<8x384xf32> to vector<8x128xf32>
    %66 = vector.extract_strided_slice %56 {offsets = [0, 128], sizes = [8, 128], strides = [1, 1]} : vector<8x384xf32> to vector<8x128xf32>
    %67 = arith.addf %65, %66 : vector<8x128xf32>
    %68 = arith.negf %67 : vector<8x128xf32>
    %69 = math.exp %68 : vector<8x128xf32>
    %cst_24 = arith.constant 1.000000e+00 : f32
    %70 = vector.broadcast %cst_24 : f32 to vector<8x128xf32>
    %71 = arith.addf %70, %69 : vector<8x128xf32>
    %72 = arith.divf %70, %71 : vector<8x128xf32>
    %73 = vector.extract_strided_slice %50 {offsets = [0, 256], sizes = [8, 128], strides = [1, 1]} : vector<8x384xf32> to vector<8x128xf32>
    %74 = vector.extract_strided_slice %56 {offsets = [0, 256], sizes = [8, 128], strides = [1, 1]} : vector<8x384xf32> to vector<8x128xf32>
    %75 = arith.addf %74, %18 : vector<8x128xf32>
    %76 = arith.mulf %64, %75 : vector<8x128xf32>
    %77 = arith.addf %73, %76 : vector<8x128xf32>
    %78 = math.tanh %77 : vector<8x128xf32>
    %cst_25 = arith.constant 1.000000e+00 : f32
    %79 = vector.broadcast %cst_25 : f32 to vector<8x128xf32>
    %80 = arith.subf %79, %72 : vector<8x128xf32>
    %81 = arith.mulf %80, %78 : vector<8x128xf32>
    %82 = arith.mulf %72, %48 : vector<8x128xf32>
    %83 = arith.addf %81, %82 : vector<8x128xf32>
    %c8_26 = arith.constant 8 : index
    %c0_27 = arith.constant 0 : index
    %84 = vector.load %arg13[%c8_26, %c0_27] : memref<64x128xf32, #tpu.memory_space<vmem>>, vector<8x128xf32>
    tpu.vector_store %arg13[%c8_26, %c0_27], %83 {strides = array<i32>} : memref<64x128xf32, #tpu.memory_space<vmem>>, vector<8x128xf32>,
    %c16 = arith.constant 16 : index
    %c0_28 = arith.constant 0 : index
    %85 = vector.load %arg12[%c16, %c0_28] : memref<64x384xf32, #tpu.memory_space<vmem>>, vector<8x384xf32>
    %86 = arith.truncf %83 : vector<8x128xf32> to vector<8x128xbf16>
    %c0_29 = arith.constant 0 : index
    %c0_30 = arith.constant 0 : index
    %87 = vector.load %arg3[%c0_29, %c0_30] : memref<128x768xbf16, #tpu.memory_space<vmem>>, vector<128x768xbf16>
    %cst_31 = arith.constant dense<0.000000e+00> : vector<8x768xf32>
    %88 = tpu.matmul %86, %87, %cst_31 {dimension_numbers = #tpu.dot_dimension_numbers<[1], [0], [0], [1], [0, 0, 1, 1], [], []>} : vector<8x128xbf16>, vector<128x768xbf16>, vector<8x768xf32> -> vector<8x768xf32>
    %89 = vector.extract_strided_slice %88 {offsets = [0, 0], sizes = [8, 384], strides = [1, 1]} : vector<8x768xf32> to vector<8x384xf32>
    %90 = vector.extract_strided_slice %88 {offsets = [0, 384], sizes = [8, 384], strides = [1, 1]} : vector<8x768xf32> to vector<8x384xf32>
    %91 = arith.select %17, %89, %90 : vector<8x384xi1>, vector<8x384xf32>
    %92 = vector.extract_strided_slice %85 {offsets = [0, 0], sizes = [8, 128], strides = [1, 1]} : vector<8x384xf32> to vector<8x128xf32>
    %93 = vector.extract_strided_slice %91 {offsets = [0, 0], sizes = [8, 128], strides = [1, 1]} : vector<8x384xf32> to vector<8x128xf32>
    %94 = arith.addf %92, %93 : vector<8x128xf32>
    %95 = arith.negf %94 : vector<8x128xf32>
    %96 = math.exp %95 : vector<8x128xf32>
    %cst_32 = arith.constant 1.000000e+00 : f32
    %97 = vector.broadcast %cst_32 : f32 to vector<8x128xf32>
    %98 = arith.addf %97, %96 : vector<8x128xf32>
    %99 = arith.divf %97, %98 : vector<8x128xf32>
    %100 = vector.extract_strided_slice %85 {offsets = [0, 128], sizes = [8, 128], strides = [1, 1]} : vector<8x384xf32> to vector<8x128xf32>
    %101 = vector.extract_strided_slice %91 {offsets = [0, 128], sizes = [8, 128], strides = [1, 1]} : vector<8x384xf32> to vector<8x128xf32>
    %102 = arith.addf %100, %101 : vector<8x128xf32>
    %103 = arith.negf %102 : vector<8x128xf32>
    %104 = math.exp %103 : vector<8x128xf32>
    %cst_33 = arith.constant 1.000000e+00 : f32
    %105 = vector.broadcast %cst_33 : f32 to vector<8x128xf32>
    %106 = arith.addf %105, %104 : vector<8x128xf32>
    %107 = arith.divf %105, %106 : vector<8x128xf32>
    %108 = vector.extract_strided_slice %85 {offsets = [0, 256], sizes = [8, 128], strides = [1, 1]} : vector<8x384xf32> to vector<8x128xf32>
    %109 = vector.extract_strided_slice %91 {offsets = [0, 256], sizes = [8, 128], strides = [1, 1]} : vector<8x384xf32> to vector<8x128xf32>
    %110 = arith.addf %109, %18 : vector<8x128xf32>
    %111 = arith.mulf %99, %110 : vector<8x128xf32>
    %112 = arith.addf %108, %111 : vector<8x128xf32>
    %113 = math.tanh %112 : vector<8x128xf32>
    %cst_34 = arith.constant 1.000000e+00 : f32
    %114 = vector.broadcast %cst_34 : f32 to vector<8x128xf32>
    %115 = arith.subf %114, %107 : vector<8x128xf32>
    %116 = arith.mulf %115, %113 : vector<8x128xf32>
    %117 = arith.mulf %107, %83 : vector<8x128xf32>
    %118 = arith.addf %116, %117 : vector<8x128xf32>
    %c16_35 = arith.constant 16 : index
    %c0_36 = arith.constant 0 : index
    %119 = vector.load %arg13[%c16_35, %c0_36] : memref<64x128xf32, #tpu.memory_space<vmem>>, vector<8x128xf32>
    tpu.vector_store %arg13[%c16_35, %c0_36], %118 {strides = array<i32>} : memref<64x128xf32, #tpu.memory_space<vmem>>, vector<8x128xf32>,
    %c24 = arith.constant 24 : index
    %c0_37 = arith.constant 0 : index
    %120 = vector.load %arg12[%c24, %c0_37] : memref<64x384xf32, #tpu.memory_space<vmem>>, vector<8x384xf32>
    %121 = arith.truncf %118 : vector<8x128xf32> to vector<8x128xbf16>
    %c0_38 = arith.constant 0 : index
    %c0_39 = arith.constant 0 : index
    %122 = vector.load %arg3[%c0_38, %c0_39] : memref<128x768xbf16, #tpu.memory_space<vmem>>, vector<128x768xbf16>
    %cst_40 = arith.constant dense<0.000000e+00> : vector<8x768xf32>
    %123 = tpu.matmul %121, %122, %cst_40 {dimension_numbers = #tpu.dot_dimension_numbers<[1], [0], [0], [1], [0, 0, 1, 1], [], []>} : vector<8x128xbf16>, vector<128x768xbf16>, vector<8x768xf32> -> vector<8x768xf32>
    %124 = vector.extract_strided_slice %123 {offsets = [0, 0], sizes = [8, 384], strides = [1, 1]} : vector<8x768xf32> to vector<8x384xf32>
    %125 = vector.extract_strided_slice %123 {offsets = [0, 384], sizes = [8, 384], strides = [1, 1]} : vector<8x768xf32> to vector<8x384xf32>
    %126 = arith.select %17, %124, %125 : vector<8x384xi1>, vector<8x384xf32>
    %127 = vector.extract_strided_slice %120 {offsets = [0, 0], sizes = [8, 128], strides = [1, 1]} : vector<8x384xf32> to vector<8x128xf32>
    %128 = vector.extract_strided_slice %126 {offsets = [0, 0], sizes = [8, 128], strides = [1, 1]} : vector<8x384xf32> to vector<8x128xf32>
    %129 = arith.addf %127, %128 : vector<8x128xf32>
    %130 = arith.negf %129 : vector<8x128xf32>
    %131 = math.exp %130 : vector<8x128xf32>
    %cst_41 = arith.constant 1.000000e+00 : f32
    %132 = vector.broadcast %cst_41 : f32 to vector<8x128xf32>
    %133 = arith.addf %132, %131 : vector<8x128xf32>
    %134 = arith.divf %132, %133 : vector<8x128xf32>
    %135 = vector.extract_strided_slice %120 {offsets = [0, 128], sizes = [8, 128], strides = [1, 1]} : vector<8x384xf32> to vector<8x128xf32>
    %136 = vector.extract_strided_slice %126 {offsets = [0, 128], sizes = [8, 128], strides = [1, 1]} : vector<8x384xf32> to vector<8x128xf32>
    %137 = arith.addf %135, %136 : vector<8x128xf32>
    %138 = arith.negf %137 : vector<8x128xf32>
    %139 = math.exp %138 : vector<8x128xf32>
    %cst_42 = arith.constant 1.000000e+00 : f32
    %140 = vector.broadcast %cst_42 : f32 to vector<8x128xf32>
    %141 = arith.addf %140, %139 : vector<8x128xf32>
    %142 = arith.divf %140, %141 : vector<8x128xf32>
    %143 = vector.extract_strided_slice %120 {offsets = [0, 256], sizes = [8, 128], strides = [1, 1]} : vector<8x384xf32> to vector<8x128xf32>
    %144 = vector.extract_strided_slice %126 {offsets = [0, 256], sizes = [8, 128], strides = [1, 1]} : vector<8x384xf32> to vector<8x128xf32>
    %145 = arith.addf %144, %18 : vector<8x128xf32>
    %146 = arith.mulf %134, %145 : vector<8x128xf32>
    %147 = arith.addf %143, %146 : vector<8x128xf32>
    %148 = math.tanh %147 : vector<8x128xf32>
    %cst_43 = arith.constant 1.000000e+00 : f32
    %149 = vector.broadcast %cst_43 : f32 to vector<8x128xf32>
    %150 = arith.subf %149, %142 : vector<8x128xf32>
    %151 = arith.mulf %150, %148 : vector<8x128xf32>
    %152 = arith.mulf %142, %118 : vector<8x128xf32>
    %153 = arith.addf %151, %152 : vector<8x128xf32>
    %c24_44 = arith.constant 24 : index
    %c0_45 = arith.constant 0 : index
    %154 = vector.load %arg13[%c24_44, %c0_45] : memref<64x128xf32, #tpu.memory_space<vmem>>, vector<8x128xf32>
    tpu.vector_store %arg13[%c24_44, %c0_45], %153 {strides = array<i32>} : memref<64x128xf32, #tpu.memory_space<vmem>>, vector<8x128xf32>,
    %c32 = arith.constant 32 : index
    %c0_46 = arith.constant 0 : index
    %155 = vector.load %arg12[%c32, %c0_46] : memref<64x384xf32, #tpu.memory_space<vmem>>, vector<8x384xf32>
    %156 = arith.truncf %153 : vector<8x128xf32> to vector<8x128xbf16>
    %c0_47 = arith.constant 0 : index
    %c0_48 = arith.constant 0 : index
    %157 = vector.load %arg3[%c0_47, %c0_48] : memref<128x768xbf16, #tpu.memory_space<vmem>>, vector<128x768xbf16>
    %cst_49 = arith.constant dense<0.000000e+00> : vector<8x768xf32>
    %158 = tpu.matmul %156, %157, %cst_49 {dimension_numbers = #tpu.dot_dimension_numbers<[1], [0], [0], [1], [0, 0, 1, 1], [], []>} : vector<8x128xbf16>, vector<128x768xbf16>, vector<8x768xf32> -> vector<8x768xf32>
    %159 = vector.extract_strided_slice %158 {offsets = [0, 0], sizes = [8, 384], strides = [1, 1]} : vector<8x768xf32> to vector<8x384xf32>
    %160 = vector.extract_strided_slice %158 {offsets = [0, 384], sizes = [8, 384], strides = [1, 1]} : vector<8x768xf32> to vector<8x384xf32>
    %161 = arith.select %17, %159, %160 : vector<8x384xi1>, vector<8x384xf32>
    %162 = vector.extract_strided_slice %155 {offsets = [0, 0], sizes = [8, 128], strides = [1, 1]} : vector<8x384xf32> to vector<8x128xf32>
    %163 = vector.extract_strided_slice %161 {offsets = [0, 0], sizes = [8, 128], strides = [1, 1]} : vector<8x384xf32> to vector<8x128xf32>
    %164 = arith.addf %162, %163 : vector<8x128xf32>
    %165 = arith.negf %164 : vector<8x128xf32>
    %166 = math.exp %165 : vector<8x128xf32>
    %cst_50 = arith.constant 1.000000e+00 : f32
    %167 = vector.broadcast %cst_50 : f32 to vector<8x128xf32>
    %168 = arith.addf %167, %166 : vector<8x128xf32>
    %169 = arith.divf %167, %168 : vector<8x128xf32>
    %170 = vector.extract_strided_slice %155 {offsets = [0, 128], sizes = [8, 128], strides = [1, 1]} : vector<8x384xf32> to vector<8x128xf32>
    %171 = vector.extract_strided_slice %161 {offsets = [0, 128], sizes = [8, 128], strides = [1, 1]} : vector<8x384xf32> to vector<8x128xf32>
    %172 = arith.addf %170, %171 : vector<8x128xf32>
    %173 = arith.negf %172 : vector<8x128xf32>
    %174 = math.exp %173 : vector<8x128xf32>
    %cst_51 = arith.constant 1.000000e+00 : f32
    %175 = vector.broadcast %cst_51 : f32 to vector<8x128xf32>
    %176 = arith.addf %175, %174 : vector<8x128xf32>
    %177 = arith.divf %175, %176 : vector<8x128xf32>
    %178 = vector.extract_strided_slice %155 {offsets = [0, 256], sizes = [8, 128], strides = [1, 1]} : vector<8x384xf32> to vector<8x128xf32>
    %179 = vector.extract_strided_slice %161 {offsets = [0, 256], sizes = [8, 128], strides = [1, 1]} : vector<8x384xf32> to vector<8x128xf32>
    %180 = arith.addf %179, %18 : vector<8x128xf32>
    %181 = arith.mulf %169, %180 : vector<8x128xf32>
    %182 = arith.addf %178, %181 : vector<8x128xf32>
    %183 = math.tanh %182 : vector<8x128xf32>
    %cst_52 = arith.constant 1.000000e+00 : f32
    %184 = vector.broadcast %cst_52 : f32 to vector<8x128xf32>
    %185 = arith.subf %184, %177 : vector<8x128xf32>
    %186 = arith.mulf %185, %183 : vector<8x128xf32>
    %187 = arith.mulf %177, %153 : vector<8x128xf32>
    %188 = arith.addf %186, %187 : vector<8x128xf32>
    %c32_53 = arith.constant 32 : index
    %c0_54 = arith.constant 0 : index
    %189 = vector.load %arg13[%c32_53, %c0_54] : memref<64x128xf32, #tpu.memory_space<vmem>>, vector<8x128xf32>
    tpu.vector_store %arg13[%c32_53, %c0_54], %188 {strides = array<i32>} : memref<64x128xf32, #tpu.memory_space<vmem>>, vector<8x128xf32>,
    %c40 = arith.constant 40 : index
    %c0_55 = arith.constant 0 : index
    %190 = vector.load %arg12[%c40, %c0_55] : memref<64x384xf32, #tpu.memory_space<vmem>>, vector<8x384xf32>
    %191 = arith.truncf %188 : vector<8x128xf32> to vector<8x128xbf16>
    %c0_56 = arith.constant 0 : index
    %c0_57 = arith.constant 0 : index
    %192 = vector.load %arg3[%c0_56, %c0_57] : memref<128x768xbf16, #tpu.memory_space<vmem>>, vector<128x768xbf16>
    %cst_58 = arith.constant dense<0.000000e+00> : vector<8x768xf32>
    %193 = tpu.matmul %191, %192, %cst_58 {dimension_numbers = #tpu.dot_dimension_numbers<[1], [0], [0], [1], [0, 0, 1, 1], [], []>} : vector<8x128xbf16>, vector<128x768xbf16>, vector<8x768xf32> -> vector<8x768xf32>
    %194 = vector.extract_strided_slice %193 {offsets = [0, 0], sizes = [8, 384], strides = [1, 1]} : vector<8x768xf32> to vector<8x384xf32>
    %195 = vector.extract_strided_slice %193 {offsets = [0, 384], sizes = [8, 384], strides = [1, 1]} : vector<8x768xf32> to vector<8x384xf32>
    %196 = arith.select %17, %194, %195 : vector<8x384xi1>, vector<8x384xf32>
    %197 = vector.extract_strided_slice %190 {offsets = [0, 0], sizes = [8, 128], strides = [1, 1]} : vector<8x384xf32> to vector<8x128xf32>
    %198 = vector.extract_strided_slice %196 {offsets = [0, 0], sizes = [8, 128], strides = [1, 1]} : vector<8x384xf32> to vector<8x128xf32>
    %199 = arith.addf %197, %198 : vector<8x128xf32>
    %200 = arith.negf %199 : vector<8x128xf32>
    %201 = math.exp %200 : vector<8x128xf32>
    %cst_59 = arith.constant 1.000000e+00 : f32
    %202 = vector.broadcast %cst_59 : f32 to vector<8x128xf32>
    %203 = arith.addf %202, %201 : vector<8x128xf32>
    %204 = arith.divf %202, %203 : vector<8x128xf32>
    %205 = vector.extract_strided_slice %190 {offsets = [0, 128], sizes = [8, 128], strides = [1, 1]} : vector<8x384xf32> to vector<8x128xf32>
    %206 = vector.extract_strided_slice %196 {offsets = [0, 128], sizes = [8, 128], strides = [1, 1]} : vector<8x384xf32> to vector<8x128xf32>
    %207 = arith.addf %205, %206 : vector<8x128xf32>
    %208 = arith.negf %207 : vector<8x128xf32>
    %209 = math.exp %208 : vector<8x128xf32>
    %cst_60 = arith.constant 1.000000e+00 : f32
    %210 = vector.broadcast %cst_60 : f32 to vector<8x128xf32>
    %211 = arith.addf %210, %209 : vector<8x128xf32>
    %212 = arith.divf %210, %211 : vector<8x128xf32>
    %213 = vector.extract_strided_slice %190 {offsets = [0, 256], sizes = [8, 128], strides = [1, 1]} : vector<8x384xf32> to vector<8x128xf32>
    %214 = vector.extract_strided_slice %196 {offsets = [0, 256], sizes = [8, 128], strides = [1, 1]} : vector<8x384xf32> to vector<8x128xf32>
    %215 = arith.addf %214, %18 : vector<8x128xf32>
    %216 = arith.mulf %204, %215 : vector<8x128xf32>
    %217 = arith.addf %213, %216 : vector<8x128xf32>
    %218 = math.tanh %217 : vector<8x128xf32>
    %cst_61 = arith.constant 1.000000e+00 : f32
    %219 = vector.broadcast %cst_61 : f32 to vector<8x128xf32>
    %220 = arith.subf %219, %212 : vector<8x128xf32>
    %221 = arith.mulf %220, %218 : vector<8x128xf32>
    %222 = arith.mulf %212, %188 : vector<8x128xf32>
    %223 = arith.addf %221, %222 : vector<8x128xf32>
    %c40_62 = arith.constant 40 : index
    %c0_63 = arith.constant 0 : index
    %224 = vector.load %arg13[%c40_62, %c0_63] : memref<64x128xf32, #tpu.memory_space<vmem>>, vector<8x128xf32>
    tpu.vector_store %arg13[%c40_62, %c0_63], %223 {strides = array<i32>} : memref<64x128xf32, #tpu.memory_space<vmem>>, vector<8x128xf32>,
    %c48 = arith.constant 48 : index
    %c0_64 = arith.constant 0 : index
    %225 = vector.load %arg12[%c48, %c0_64] : memref<64x384xf32, #tpu.memory_space<vmem>>, vector<8x384xf32>
    %226 = arith.truncf %223 : vector<8x128xf32> to vector<8x128xbf16>
    %c0_65 = arith.constant 0 : index
    %c0_66 = arith.constant 0 : index
    %227 = vector.load %arg3[%c0_65, %c0_66] : memref<128x768xbf16, #tpu.memory_space<vmem>>, vector<128x768xbf16>
    %cst_67 = arith.constant dense<0.000000e+00> : vector<8x768xf32>
    %228 = tpu.matmul %226, %227, %cst_67 {dimension_numbers = #tpu.dot_dimension_numbers<[1], [0], [0], [1], [0, 0, 1, 1], [], []>} : vector<8x128xbf16>, vector<128x768xbf16>, vector<8x768xf32> -> vector<8x768xf32>
    %229 = vector.extract_strided_slice %228 {offsets = [0, 0], sizes = [8, 384], strides = [1, 1]} : vector<8x768xf32> to vector<8x384xf32>
    %230 = vector.extract_strided_slice %228 {offsets = [0, 384], sizes = [8, 384], strides = [1, 1]} : vector<8x768xf32> to vector<8x384xf32>
    %231 = arith.select %17, %229, %230 : vector<8x384xi1>, vector<8x384xf32>
    %232 = vector.extract_strided_slice %225 {offsets = [0, 0], sizes = [8, 128], strides = [1, 1]} : vector<8x384xf32> to vector<8x128xf32>
    %233 = vector.extract_strided_slice %231 {offsets = [0, 0], sizes = [8, 128], strides = [1, 1]} : vector<8x384xf32> to vector<8x128xf32>
    %234 = arith.addf %232, %233 : vector<8x128xf32>
    %235 = arith.negf %234 : vector<8x128xf32>
    %236 = math.exp %235 : vector<8x128xf32>
    %cst_68 = arith.constant 1.000000e+00 : f32
    %237 = vector.broadcast %cst_68 : f32 to vector<8x128xf32>
    %238 = arith.addf %237, %236 : vector<8x128xf32>
    %239 = arith.divf %237, %238 : vector<8x128xf32>
    %240 = vector.extract_strided_slice %225 {offsets = [0, 128], sizes = [8, 128], strides = [1, 1]} : vector<8x384xf32> to vector<8x128xf32>
    %241 = vector.extract_strided_slice %231 {offsets = [0, 128], sizes = [8, 128], strides = [1, 1]} : vector<8x384xf32> to vector<8x128xf32>
    %242 = arith.addf %240, %241 : vector<8x128xf32>
    %243 = arith.negf %242 : vector<8x128xf32>
    %244 = math.exp %243 : vector<8x128xf32>
    %cst_69 = arith.constant 1.000000e+00 : f32
    %245 = vector.broadcast %cst_69 : f32 to vector<8x128xf32>
    %246 = arith.addf %245, %244 : vector<8x128xf32>
    %247 = arith.divf %245, %246 : vector<8x128xf32>
    %248 = vector.extract_strided_slice %225 {offsets = [0, 256], sizes = [8, 128], strides = [1, 1]} : vector<8x384xf32> to vector<8x128xf32>
    %249 = vector.extract_strided_slice %231 {offsets = [0, 256], sizes = [8, 128], strides = [1, 1]} : vector<8x384xf32> to vector<8x128xf32>
    %250 = arith.addf %249, %18 : vector<8x128xf32>
    %251 = arith.mulf %239, %250 : vector<8x128xf32>
    %252 = arith.addf %248, %251 : vector<8x128xf32>
    %253 = math.tanh %252 : vector<8x128xf32>
    %cst_70 = arith.constant 1.000000e+00 : f32
    %254 = vector.broadcast %cst_70 : f32 to vector<8x128xf32>
    %255 = arith.subf %254, %247 : vector<8x128xf32>
    %256 = arith.mulf %255, %253 : vector<8x128xf32>
    %257 = arith.mulf %247, %223 : vector<8x128xf32>
    %258 = arith.addf %256, %257 : vector<8x128xf32>
    %c48_71 = arith.constant 48 : index
    %c0_72 = arith.constant 0 : index
    %259 = vector.load %arg13[%c48_71, %c0_72] : memref<64x128xf32, #tpu.memory_space<vmem>>, vector<8x128xf32>
    tpu.vector_store %arg13[%c48_71, %c0_72], %258 {strides = array<i32>} : memref<64x128xf32, #tpu.memory_space<vmem>>, vector<8x128xf32>,
    %c56 = arith.constant 56 : index
    %c0_73 = arith.constant 0 : index
    %260 = vector.load %arg12[%c56, %c0_73] : memref<64x384xf32, #tpu.memory_space<vmem>>, vector<8x384xf32>
    %261 = arith.truncf %258 : vector<8x128xf32> to vector<8x128xbf16>
    %c0_74 = arith.constant 0 : index
    %c0_75 = arith.constant 0 : index
    %262 = vector.load %arg3[%c0_74, %c0_75] : memref<128x768xbf16, #tpu.memory_space<vmem>>, vector<128x768xbf16>
    %cst_76 = arith.constant dense<0.000000e+00> : vector<8x768xf32>
    %263 = tpu.matmul %261, %262, %cst_76 {dimension_numbers = #tpu.dot_dimension_numbers<[1], [0], [0], [1], [0, 0, 1, 1], [], []>} : vector<8x128xbf16>, vector<128x768xbf16>, vector<8x768xf32> -> vector<8x768xf32>
    %264 = vector.extract_strided_slice %263 {offsets = [0, 0], sizes = [8, 384], strides = [1, 1]} : vector<8x768xf32> to vector<8x384xf32>
    %265 = vector.extract_strided_slice %263 {offsets = [0, 384], sizes = [8, 384], strides = [1, 1]} : vector<8x768xf32> to vector<8x384xf32>
    %266 = arith.select %17, %264, %265 : vector<8x384xi1>, vector<8x384xf32>
    %267 = vector.extract_strided_slice %260 {offsets = [0, 0], sizes = [8, 128], strides = [1, 1]} : vector<8x384xf32> to vector<8x128xf32>
    %268 = vector.extract_strided_slice %266 {offsets = [0, 0], sizes = [8, 128], strides = [1, 1]} : vector<8x384xf32> to vector<8x128xf32>
    %269 = arith.addf %267, %268 : vector<8x128xf32>
    %270 = arith.negf %269 : vector<8x128xf32>
    %271 = math.exp %270 : vector<8x128xf32>
    %cst_77 = arith.constant 1.000000e+00 : f32
    %272 = vector.broadcast %cst_77 : f32 to vector<8x128xf32>
    %273 = arith.addf %272, %271 : vector<8x128xf32>
    %274 = arith.divf %272, %273 : vector<8x128xf32>
    %275 = vector.extract_strided_slice %260 {offsets = [0, 128], sizes = [8, 128], strides = [1, 1]} : vector<8x384xf32> to vector<8x128xf32>
    %276 = vector.extract_strided_slice %266 {offsets = [0, 128], sizes = [8, 128], strides = [1, 1]} : vector<8x384xf32> to vector<8x128xf32>
    %277 = arith.addf %275, %276 : vector<8x128xf32>
    %278 = arith.negf %277 : vector<8x128xf32>
    %279 = math.exp %278 : vector<8x128xf32>
    %cst_78 = arith.constant 1.000000e+00 : f32
    %280 = vector.broadcast %cst_78 : f32 to vector<8x128xf32>
    %281 = arith.addf %280, %279 : vector<8x128xf32>
    %282 = arith.divf %280, %281 : vector<8x128xf32>
    %283 = vector.extract_strided_slice %260 {offsets = [0, 256], sizes = [8, 128], strides = [1, 1]} : vector<8x384xf32> to vector<8x128xf32>
    %284 = vector.extract_strided_slice %266 {offsets = [0, 256], sizes = [8, 128], strides = [1, 1]} : vector<8x384xf32> to vector<8x128xf32>
    %285 = arith.addf %284, %18 : vector<8x128xf32>
    %286 = arith.mulf %274, %285 : vector<8x128xf32>
    %287 = arith.addf %283, %286 : vector<8x128xf32>
    %288 = math.tanh %287 : vector<8x128xf32>
    %cst_79 = arith.constant 1.000000e+00 : f32
    %289 = vector.broadcast %cst_79 : f32 to vector<8x128xf32>
    %290 = arith.subf %289, %282 : vector<8x128xf32>
    %291 = arith.mulf %290, %288 : vector<8x128xf32>
    %292 = arith.mulf %282, %258 : vector<8x128xf32>
    %293 = arith.addf %291, %292 : vector<8x128xf32>
    %c56_80 = arith.constant 56 : index
    %c0_81 = arith.constant 0 : index
    %294 = vector.load %arg13[%c56_80, %c0_81] : memref<64x128xf32, #tpu.memory_space<vmem>>, vector<8x128xf32>
    tpu.vector_store %arg13[%c56_80, %c0_81], %293 {strides = array<i32>} : memref<64x128xf32, #tpu.memory_space<vmem>>, vector<8x128xf32>,
    %c0_82 = arith.constant 0 : index
    %c0_83 = arith.constant 0 : index
    %295 = vector.load %arg5[%c0_82, %c0_83] : memref<16x64xf32, #tpu.memory_space<vmem>>, vector<16x64xf32>
    %c0_84 = arith.constant 0 : index
    %c0_85 = arith.constant 0 : index
    %296 = vector.load %arg13[%c0_84, %c0_85] : memref<64x128xf32, #tpu.memory_space<vmem>>, vector<64x128xf32>
    %cst_86 = arith.constant dense<0.000000e+00> : vector<16x128xf32>
    %297 = tpu.matmul %295, %296, %cst_86 {dimension_numbers = #tpu.dot_dimension_numbers<[1], [0], [0], [1], [0, 0, 1, 1], [], []>} : vector<16x64xf32>, vector<64x128xf32>, vector<16x128xf32> -> vector<16x128xf32>
    %298 = vector.extract_strided_slice %297 {offsets = [0, 0], sizes = [8, 128], strides = [1, 1]} : vector<16x128xf32> to vector<8x128xf32>
    %299 = vector.extract_strided_slice %297 {offsets = [8, 0], sizes = [8, 128], strides = [1, 1]} : vector<16x128xf32> to vector<8x128xf32>
    %300 = tpu.concatenate %298, %299 in 1 : vector<8x128xf32>, vector<8x128xf32> -> vector<8x256xf32>
    %c0_87 = arith.constant 0 : index
    %c0_88 = arith.constant 0 : index
    %301 = vector.load %arg9[%c0_87, %c0_88] : memref<8x256xf32, #tpu.memory_space<vmem>>, vector<8x256xf32>
    tpu.vector_store %arg9[%c0_87, %c0_88], %300 {strides = array<i32>} : memref<8x256xf32, #tpu.memory_space<vmem>>, vector<8x256xf32>,
    %c0_89 = arith.constant 0 : index
    %c0_90 = arith.constant 0 : index
    %302 = vector.load %arg6[%c0_89, %c0_90] : memref<1x256xf32, #tpu.memory_space<vmem>>, vector<1x256xf32>
    %303 = vector.broadcast %302 : vector<1x256xf32> to vector<8x256xf32>
    %304 = arith.mulf %300, %303 : vector<8x256xf32>
    %cst_91 = arith.constant dense<0.000000e+00> : vector<8xf32>
    %305 = vector.multi_reduction <add>, %304, %cst_91 [1] : vector<8x256xf32> to vector<8xf32>
    %306 = vector.shape_cast %305 : vector<8xf32> to vector<8x1xf32>
    %c0_92 = arith.constant 0 : index
    %c0_93 = arith.constant 0 : index
    %307 = vector.load %arg7[%c0_92, %c0_93] : memref<1x1xf32, #tpu.memory_space<vmem>>, vector<1x1xf32>
    %308 = vector.broadcast %307 : vector<1x1xf32> to vector<8x1xf32>
    %309 = arith.addf %306, %308 : vector<8x1xf32>
    %310 = vector.shape_cast %309 : vector<8x1xf32> to vector<8x1xf32>
    %311 = vector.broadcast %310 : vector<8x1xf32> to vector<8x128xf32>
    %c0_94 = arith.constant 0 : index
    %c0_95 = arith.constant 0 : index
    %312 = vector.load %arg10[%c0_94, %c0_95] : memref<8x128xf32, #tpu.memory_space<vmem>>, vector<8x128xf32>
    tpu.vector_store %arg10[%c0_94, %c0_95], %311 {strides = array<i32>} : memref<8x128xf32, #tpu.memory_space<vmem>>, vector<8x128xf32>,
    %c0_96 = arith.constant 0 : index
    %c0_97 = arith.constant 0 : index
    %313 = vector.load %arg8[%c0_96, %c0_97] : memref<8x128xf32, #tpu.memory_space<vmem>>, vector<8x128xf32>
    %314 = arith.subf %311, %313 : vector<8x128xf32>
    %315 = arith.mulf %314, %314 : vector<8x128xf32>
    %316 = vector.shape_cast %315 : vector<8x128xf32> to vector<1x8x128xf32>
    %cst_98 = arith.constant dense<0.000000e+00> : vector<1xf32>
    %317 = vector.multi_reduction <add>, %316, %cst_98 [1, 2] : vector<1x8x128xf32> to vector<1xf32>
    %318 = vector.shape_cast %317 : vector<1xf32> to vector<1x1x1xf32>
    %319 = vector.extract %318[0, 0, 0] : f32 from vector<1x1x1xf32>
    %cst_99 = arith.constant 1.024000e+03 : f32
    %320 = arith.divf %319, %cst_99 : f32
    %321 = vector.broadcast %320 : f32 to vector<1x1xf32>
    %322 = vector.shape_cast %321 : vector<1x1xf32> to vector<1x1xf32>
    %323 = vector.broadcast %322 : vector<1x1xf32> to vector<8x128xf32>
    %c0_100 = arith.constant 0 : index
    %c0_101 = arith.constant 0 : index
    %324 = vector.load %arg11[%c0_100, %c0_101] : memref<8x128xf32, #tpu.memory_space<vmem>>, vector<8x128xf32>
    tpu.vector_store %arg11[%c0_100, %c0_101], %323 {strides = array<i32>} : memref<8x128xf32, #tpu.memory_space<vmem>>, vector<8x128xf32>,
    return
  }
}

</mosaic_0001>

<bundles_post_ra>
// kernel: tpu_custom_call.1
= control target key start
LH: loop header
LB: loop body
LE: loop exit
PB: predicated region body
PF: predicated region fallthrough
CT: control target
= control target key end

     0   :  { %s6260_s0 = inlined_call_operand.hbm [shape: bf16[64,128], index: 0, kind: input, shape index: {}]   ;;  %s6261_s1 = inlined_call_operand.hbm [shape: bf16[128,768], index: 1, kind: input, shape index: {}]   ;;  %s6262_s2 = inlined_call_operand.hbm [shape: f32[1,768], index: 2, kind: input, shape index: {}]   ;;  %s6263_s3 = inlined_call_operand.hbm [shape: bf16[128,768], index: 3, kind: input, shape index: {}]   ;;  %s6264_s4 = inlined_call_operand.hbm [shape: f32[8,128], index: 4, kind: input, shape index: {}]   ;;  %s6265_s5 = inlined_call_operand.vmem [shape: f32[16,64], index: 5, kind: input, shape index: {}]   ;;  %s6266_s6 = inlined_call_operand.vmem [shape: f32[1,256], index: 6, kind: input, shape index: {}]   ;;  %s6267_s7 = inlined_call_operand.<no memory space> [shape: f32[1,1], index: 7, kind: input, shape index: {}]   ;;  %s6268_s8 = inlined_call_operand.vmem [shape: f32[8,128], index: 8, kind: input, shape index: {}]   ;;  %s6269_s9 = inlined_call_operand.hbm [shape: f32[8,256], index: 9, kind: output, shape index: {0}]   ;;  %s6270_s10 = inlined_call_operand.hbm [shape: f32[8,128], index: 10, kind: output, shape index: {1}]   ;;  %s6271_s11 = inlined_call_operand.hbm [shape: f32[8,128], index: 11, kind: output, shape index: {2}]  }
   0x1   :  { %v17_v0 = vstv %s6267_s7 }
   0x2   :  { %18 = vst [vmem:[#allocation4] sm:$0x1] %v17_v0 }
   0x3   :  { %19 = vsyncpa [#allocation6], 0 }
   0x4   :  { %20 = vsyncpa [#allocation9], 0 }
   0x5   :  { %21 = vsyncpa [#allocation12], 0 }
   0x6   :  { %22 = vsyncpa [#allocation7], 0 }
   0x7   :  { %23 = vsyncpa [#allocation16], 0  ;;  %s5058_s19 = smov [#allocation8]   ;;  %s4872_s23 = scalar_lea.hbm %s6261_s1, 6144 }
   0x8   :  { %s41_s20 = sshll.u32 %s5058_s19, 4  ;;  %p4873_p0 = scmp.ne.s32.totalorder %s6261_s1, %s4872_s23  ;;  %s42_s20 = int_to_ptr.vmem [resolvable:$true] %s41_s20 }
   0x9   :  { %p4876_p1 = scmp.lt.u32.totalorder %s4872_s23, %s6261_s1 }
   0xb   :  { %p4878_p2 = pnand %p4876_p1, %p4873_p0 }
   0xd   :  { %4881 = shalt.err (!%p4878_p2)
}
   0xe   :  { %s4882_s7 = scalar_lea.vmem %s42_s20, 6144  ;;  %p4887_p4 = scmp.lt.s32.totalorder %s42_s20, %s42_s20 }
   0xf   :  { %p4883_p3 = scmp.ne.s32.totalorder %s42_s20, %s4882_s7  ;;  %p4888_p5 = scmp.lt.s32.totalorder %s4882_s7, %s4882_s7 }
  0x11   :  { %p4889_p6 = por %p4888_p5, %p4887_p4 }
  0x13   :  { %p4890_p7 = pnand %p4889_p6, %p4883_p3 }
  0x15   :  { %4893 = shalt.err (!%p4890_p7)
}
  0x16   :  { %s5059_s28 = smov 384   ;;  %s5060_s29 = smov 24  }
  0x17   :  { %47 = dma.hbm_to_vmem [thread:$0]  %s6261_s1, 6144, %s42_s20, [#allocation9], %s5059_s28, %s5059_s28, %s5060_s29  }
  0x18   :  { %s5061_s13 = smov [#allocation11]   ;;  %s5062_s15 = smov [#allocation5]  }
  0x19   :  { %s63_s14 = sshll.u32 %s5061_s13, 4  ;;  %s29_s16 = sshll.u32 %s5062_s15, 4  ;;  %s64_s14 = int_to_ptr.vmem [resolvable:$true] %s63_s14  ;;  %s30_s16 = int_to_ptr.vmem [resolvable:$true] %s29_s16 }
  0x1a   :  { %s4894_s19 = scalar_lea.hbm %s6263_s3, 6144 }
  0x1b   :  { %p4895_p8 = scmp.ne.s32.totalorder %s6263_s3, %s4894_s19  ;;  %p4898_p9 = scmp.lt.u32.totalorder %s4894_s19, %s6263_s3 }
  0x1d   :  { %p4900_p10 = pnand %p4898_p9, %p4895_p8 }
  0x1f   :  { %4903 = shalt.err (!%p4900_p10)
}
  0x20   :  { %s4904_s1 = scalar_lea.vmem %s64_s14, 6144  ;;  %p4909_p12 = scmp.lt.s32.totalorder %s64_s14, %s64_s14 }
  0x21   :  { %p4905_p11 = scmp.ne.s32.totalorder %s64_s14, %s4904_s1  ;;  %p4910_p13 = scmp.lt.s32.totalorder %s4904_s1, %s4904_s1 }
  0x23   :  { %p4911_p0 = por %p4910_p13, %p4909_p12 }
  0x25   :  { %p4912_p1 = pnand %p4911_p0, %p4905_p11 }
  0x27   :  { %4915 = shalt.err (!%p4912_p1)
}
  0x28   :  { %69 = dma.hbm_to_vmem [thread:$0]  %s6263_s3, 6144, %s64_s14, [#allocation12], %s5059_s28, %s5059_s28, %s5060_s29  }
  0x29   :  { %s4916_s7 = scalar_lea.hbm %s6260_s0, 512 }
  0x2a   :  { %p4917_p2 = scmp.ne.s32.totalorder %s6260_s0, %s4916_s7  ;;  %p4920_p3 = scmp.lt.u32.totalorder %s4916_s7, %s6260_s0 }
  0x2c   :  { %p4922_p4 = pnand %p4920_p3, %p4917_p2 }
  0x2e   :  { %4925 = shalt.err (!%p4922_p4)
}
  0x2f   :  { %s4926_s17 = scalar_lea.vmem %s30_s16, 512  ;;  %p4931_p6 = scmp.lt.s32.totalorder %s30_s16, %s30_s16 }
  0x30   :  { %p4927_p5 = scmp.ne.s32.totalorder %s30_s16, %s4926_s17  ;;  %p4932_p7 = scmp.lt.s32.totalorder %s4926_s17, %s4926_s17 }
  0x32   :  { %p4933_p8 = por %p4932_p7, %p4931_p6 }
  0x34   :  { %p4934_p9 = pnand %p4933_p8, %p4927_p5 }
  0x36   :  { %4937 = shalt.err (!%p4934_p9)
}
  0x37   :  { %s5063_s3 = smov 64   ;;  %s5064_s28 = smov 4  }
  0x38   :  { %35 = dma.hbm_to_vmem [thread:$0]  %s6260_s0, 512, %s30_s16, [#allocation6], %s5063_s3, %s5063_s3, %s5064_s28  }
  0x39   :  { %s5065_s18 = smov [#allocation10]   ;;  %s5066_s21 = smov [#allocation13]  }
  0x3a   :  { %s54_s19 = sshll.u32 %s5065_s18, 4  ;;  %s76_s22 = sshll.u32 %s5066_s21, 4  ;;  %s55_s19 = int_to_ptr.vmem [resolvable:$true] %s54_s19  ;;  %s77_s22 = int_to_ptr.vmem [resolvable:$true] %s76_s22 }
  0x3b   :  { %s4938_s1 = scalar_lea.hbm %s6262_s2, 96 }
  0x3c   :  { %p4939_p10 = scmp.ne.s32.totalorder %s6262_s2, %s4938_s1  ;;  %p4942_p11 = scmp.lt.u32.totalorder %s4938_s1, %s6262_s2 }
  0x3e   :  { %p4944_p12 = pnand %p4942_p11, %p4939_p10 }
  0x40   :  { %4947 = shalt.err (!%p4944_p12)
}
  0x41   :  { %s4948_s0 = scalar_lea.vmem %s55_s19, 96  ;;  %p4953_p0 = scmp.lt.s32.totalorder %s55_s19, %s55_s19 }
  0x42   :  { %p4949_p13 = scmp.ne.s32.totalorder %s55_s19, %s4948_s0  ;;  %p4954_p1 = scmp.lt.s32.totalorder %s4948_s0, %s4948_s0 }
  0x44   :  { %p4955_p2 = por %p4954_p1, %p4953_p0 }
  0x46   :  { %p4956_p3 = pnand %p4955_p2, %p4949_p13 }
  0x48   :  { %4959 = shalt.err (!%p4956_p3)
}
  0x49   :  { %57 = dma.hbm_to_vmem [thread:$0]  %s6262_s2, 96, %s55_s19, [#allocation9]  }
  0x4a   :  { %s4960_s13 = scalar_lea.hbm %s6264_s4, 128 }
  0x4b   :  { %p4961_p4 = scmp.ne.s32.totalorder %s6264_s4, %s4960_s13  ;;  %p4964_p5 = scmp.lt.u32.totalorder %s4960_s13, %s6264_s4 }
  0x4d   :  { %p4966_p6 = pnand %p4964_p5, %p4961_p4 }
  0x4f   :  { %4969 = shalt.err (!%p4966_p6)
}
  0x50   :  { %s4970_s29 = scalar_lea.vmem %s77_s22, 128  ;;  %p4975_p8 = scmp.lt.s32.totalorder %s77_s22, %s77_s22 }
  0x51   :  { %p4971_p7 = scmp.ne.s32.totalorder %s77_s22, %s4970_s29  ;;  %p4976_p9 = scmp.lt.s32.totalorder %s4970_s29, %s4970_s29 }
  0x53   :  { %p4977_p10 = por %p4976_p9, %p4975_p8 }
  0x55   :  { %p4978_p11 = pnand %p4977_p10, %p4971_p7 }
  0x57   :  { %4981 = shalt.err (!%p4978_p11)
}
  0x58   :  { %79 = dma.hbm_to_vmem [thread:$0]  %s6264_s4, 128, %s77_s22, [#allocation12]  }
  0x59   :  { %5048 = dma.done.wait [#allocation6], 512  }
  0x5a   :  { %5049 = vsyncadd [#allocation6], 4294966784 }
  0x5b   :  { %5050 = dma.done.wait [#allocation9], 6240  }
  0x5c   :  { %5051 = vsyncadd [#allocation9], 4294961056 }
  0x5d   :  { %5052 = dma.done.wait [#allocation12], 6272  }
  0x5e   :  { %5053 = vsyncadd [#allocation12], 4294961024  ;;  %v6274_v1 = vmov 0   ;;  %v4517_v2 = vld [vmem:[#allocation8 + $0x4] ss:$24 sps:$4 sm:$0xff]   ;;  %v4572_v40 = vld [vmem:[#allocation5 + $0x8] sm:$0xff]  }
  0x5f   :  { %488 = vmatprep.mubr.bf16.mxu0 %v6274_v1  ;;  %561 = vmatprep.mubr.bf16.mxu1 %v6274_v1  ;;  %v4519_v3 = vld [vmem:[#allocation8 + $0xc] ss:$24 sps:$4 sm:$0xff]   ;;  %v4521_v4 = vld [vmem:[#allocation8] ss:$24 sps:$4 sm:$0xff]   ;;  %v4525_v7 = vld [vmem:[#allocation8 + $0x3c] ss:$24 sps:$4 sm:$0xff]  }
  0x60   :  { %4516 = vset.pattern.permute.xlu0 %v6274_v1  ;;  %456 = vmatprep.subr.bf16.mxu0 %v4517_v2  ;;  %v4522_v5 = vld [vmem:[#allocation8 + $0x8] ss:$24 sps:$4 sm:$0xff]   ;;  %v4523_v6 = vld [vmem:[#allocation8 + $0x34] ss:$24 sps:$4 sm:$0xff]   ;;  %v4528_v9 = vld [vmem:[#allocation8 + $0x38] ss:$24 sps:$4 sm:$0xff]  }
  0x61   :  { %529 = vmatprep.subr.bf16.mxu1 %v4519_v3  ;;  %457 = vmatpush1.bf16.msra.mxu0 %v4521_v4  ;;  %v4527_v8 = vld [vmem:[#allocation8 + $0x30] ss:$24 sps:$4 sm:$0xff]   ;;  %v4529_v10 = vld [vmem:[#allocation8 + $0x64] ss:$24 sps:$4 sm:$0xff]   ;;  %v4533_v12 = vld [vmem:[#allocation8 + $0x60] ss:$24 sps:$4 sm:$0xff]  }
  0x62   :  { %530 = vmatpush1.bf16.msra.mxu1 %v4522_v5  ;;  %458 = vmatprep.subr.bf16.mxu0 %v4523_v6  ;;  %v4531_v11 = vld [vmem:[#allocation8 + $0x6c] ss:$24 sps:$4 sm:$0xff]   ;;  %v4534_v13 = vld [vmem:[#allocation8 + $0x68] ss:$24 sps:$4 sm:$0xff]   ;;  %v4537_v15 = vld [vmem:[#allocation8 + $0x9c] ss:$24 sps:$4 sm:$0xff]  }
  0x63   :  { %531 = vmatprep.subr.bf16.mxu1 %v4525_v7  ;;  %v4535_v14 = vld [vmem:[#allocation8 + $0x94] ss:$24 sps:$4 sm:$0xff]   ;;  %v4539_v16 = vld [vmem:[#allocation8 + $0x90] ss:$24 sps:$4 sm:$0xff]   ;;  %v4541_v18 = vld [vmem:[#allocation8 + $0xc4] ss:$24 sps:$4 sm:$0xff]  }
  0x64   :  { %v4540_v17 = vld [vmem:[#allocation8 + $0x98] ss:$24 sps:$4 sm:$0xff]   ;;  %v4543_v19 = vld [vmem:[#allocation8 + $0xcc] ss:$24 sps:$4 sm:$0xff]   ;;  %v4546_v21 = vld [vmem:[#allocation8 + $0xc8] ss:$24 sps:$4 sm:$0xff]  }
  0x65   :  { %459 = vmatpush1.bf16.msra.mxu0 %v4527_v8  ;;  %v4545_v20 = vld [vmem:[#allocation8 + $0xc0] ss:$24 sps:$4 sm:$0xff]   ;;  %v4547_v22 = vld [vmem:[#allocation8 + $0xf4] ss:$24 sps:$4 sm:$0xff]   ;;  %v4551_v24 = vld [vmem:[#allocation8 + $0xf0] ss:$24 sps:$4 sm:$0xff]  }
  0x66   :  { %532 = vmatpush1.bf16.msra.mxu1 %v4528_v9  ;;  %460 = vmatprep.subr.bf16.mxu0 %v4529_v10  ;;  %v4549_v23 = vld [vmem:[#allocation8 + $0xfc] ss:$24 sps:$4 sm:$0xff]   ;;  %v4552_v25 = vld [vmem:[#allocation8 + $0xf8] ss:$24 sps:$4 sm:$0xff]   ;;  %v4555_v27 = vld [vmem:[#allocation8 + $0x12c] ss:$24 sps:$4 sm:$0xff]  }
  0x67   :  { %533 = vmatprep.subr.bf16.mxu1 %v4531_v11  ;;  %v4553_v26 = vld [vmem:[#allocation8 + $0x124] ss:$24 sps:$4 sm:$0xff]   ;;  %v4557_v28 = vld [vmem:[#allocation8 + $0x120] ss:$24 sps:$4 sm:$0xff]   ;;  %v4559_v30 = vld [vmem:[#allocation8 + $0x154] ss:$24 sps:$4 sm:$0xff]  }
  0x68   :  { %v4558_v29 = vld [vmem:[#allocation8 + $0x128] ss:$24 sps:$4 sm:$0xff]   ;;  %v4561_v31 = vld [vmem:[#allocation8 + $0x15c] ss:$24 sps:$4 sm:$0xff]   ;;  %v4564_v33 = vld [vmem:[#allocation8 + $0x158] ss:$24 sps:$4 sm:$0xff]  }
  0x69   :  { %461 = vmatpush1.bf16.msra.mxu0 %v4533_v12  ;;  %v4563_v32 = vld [vmem:[#allocation8 + $0x150] ss:$24 sps:$4 sm:$0xff]   ;;  %v4568_v34 = vld [vmem:[#allocation8 + $0x14] ss:$24 sps:$4 sm:$0xff]   ;;  %v4565_v35 = vld [vmem:[#allocation5] sm:$0xff]   ;;  %vm3873_vm9 = vcmask 523264  }
  0x6a   :  { %534 = vmatpush1.bf16.msra.mxu1 %v4534_v13  ;;  %462 = vmatprep.subr.bf16.mxu0 %v4535_v14  ;;  %v4566_v36 = vld [vmem:[#allocation8 + $0x10] ss:$24 sps:$4 sm:$0xff]   ;;  %v4571_v37 = vld [vmem:[#allocation8 + $0x44] ss:$24 sps:$4 sm:$0xff]   ;;  %v4569_v38 = vld [vmem:[#allocation8 + $0x40] ss:$24 sps:$4 sm:$0xff]  }
  0x6b   :  { %535 = vmatprep.subr.bf16.mxu1 %v4537_v15  ;;  %v4575_v39 = vld [vmem:[#allocation8 + $0x74] ss:$24 sps:$4 sm:$0xff]   ;;  %v4573_v41 = vld [vmem:[#allocation8 + $0x70] ss:$24 sps:$4 sm:$0xff]   ;;  %v4578_v42 = vld [vmem:[#allocation8 + $0xa4] ss:$24 sps:$4 sm:$0xff]  }
  0x6c   :  { %v4576_v43 = vld [vmem:[#allocation8 + $0xa0] ss:$24 sps:$4 sm:$0xff]   ;;  %v4582_v44 = vld [vmem:[#allocation8 + $0xd4] ss:$24 sps:$4 sm:$0xff]   ;;  %v4580_v46 = vld [vmem:[#allocation8 + $0xd0] ss:$24 sps:$4 sm:$0xff]  }
  0x6d   :  { %463 = vmatpush1.bf16.msra.mxu0 %v4539_v16  ;;  %v4579_v45 = vld [vmem:[#allocation5 + $0x10] sm:$0xff]   ;;  %v4585_v47 = vld [vmem:[#allocation8 + $0x104] ss:$24 sps:$4 sm:$0xff]   ;;  %v4583_v48 = vld [vmem:[#allocation8 + $0x100] ss:$24 sps:$4 sm:$0xff]   ;;  %s5068_s24 = smov [#allocation15]  }
  0x6e   :  { %536 = vmatpush1.bf16.msra.mxu1 %v4540_v17  ;;  %464 = vmatprep.subr.bf16.mxu0 %v4541_v18  ;;  %v4589_v49 = vld [vmem:[#allocation8 + $0x134] ss:$24 sps:$4 sm:$0xff]   ;;  %v4586_v50 = vld [vmem:[#allocation5 + $0x18] sm:$0xff]   ;;  %v4587_v51 = vld [vmem:[#allocation8 + $0x130] ss:$24 sps:$4 sm:$0xff]   ;;  %s4021_s1 = sshll.u32 %s5068_s24, 4  ;;  %s4022_s1 = int_to_ptr.vmem [resolvable:$true] %s4021_s1 }
  0x6f   :  { %537 = vmatprep.subr.bf16.mxu1 %v4543_v19  ;;  %v4592_v52 = vld [vmem:[#allocation8 + $0x164] ss:$24 sps:$4 sm:$0xff]   ;;  %v4590_v53 = vld [vmem:[#allocation8 + $0x160] ss:$24 sps:$4 sm:$0xff]   ;;  %v5213_v56 = vld [vmem:[#allocation11 + $0xc] ss:$24 sps:$4 sm:$0xff]   ;;  %p4987_p13 = scmp.lt.s32.totalorder %s4022_s1, %s4022_s1 }
  0x70   :  { %v5209_v54 = vld [vmem:[#allocation11 + $0x4] ss:$24 sps:$4 sm:$0xff]   ;;  %v5211_v55 = vld [vmem:[#allocation11] ss:$24 sps:$4 sm:$0xff]   ;;  %v5221_v58 = vld [vmem:[#allocation11 + $0x34] ss:$24 sps:$4 sm:$0xff]  }
  0x71   :  { %465 = vmatpush1.bf16.msra.mxu0 %v4545_v20  ;;  %6368 = vst [vmem:[#allocation23_spill] sm:$0xff] %v5209_v54  ;;  %v5216_v57 = vld [vmem:[#allocation11 + $0x8] ss:$24 sps:$4 sm:$0xff]   ;;  %v5225_v60 = vld [vmem:[#allocation11 + $0x3c] ss:$24 sps:$4 sm:$0xff]   ;;  %s5069_s20 = smov [#allocation14]  }
  0x72   :  { %538 = vmatpush1.bf16.msra.mxu1 %v4546_v21  ;;  %466 = vmatprep.subr.bf16.mxu0 %v4547_v22  ;;  %v5223_v59 = vld [vmem:[#allocation11 + $0x30] ss:$24 sps:$4 sm:$0xff]   ;;  %v5233_v62 = vld [vmem:[#allocation11 + $0x64] ss:$24 sps:$4 sm:$0xff]   ;;  %v5235_v63 = vld [vmem:[#allocation11 + $0x60] ss:$24 sps:$4 sm:$0xff]  }
  0x73   :  { %539 = vmatprep.subr.bf16.mxu1 %v4549_v23  ;;  %v5228_v61 = vld [vmem:[#allocation11 + $0x38] ss:$24 sps:$4 sm:$0xff]   ;;  %v5237_v0 = vld [vmem:[#allocation11 + $0x6c] ss:$24 sps:$4 sm:$0xff]   ;;  %v5240_v2 = vld [vmem:[#allocation11 + $0x68] ss:$24 sps:$4 sm:$0xff]  }
  0x74   :  { %6369 = vst [vmem:[#allocation24_spill] sm:$0xff] %v5240_v2  ;;  %v5245_v3 = vld [vmem:[#allocation11 + $0x94] ss:$24 sps:$4 sm:$0xff]   ;;  %v5247_v4 = vld [vmem:[#allocation11 + $0x90] ss:$24 sps:$4 sm:$0xff]   ;;  %s4011_s25 = sshll.u32 %s5069_s20, 4  ;;  %s4012_s25 = int_to_ptr.vmem [resolvable:$true] %s4011_s25 }
  0x75   :  { %467 = vmatpush1.bf16.msra.mxu0 %v4551_v24  ;;  %v5249_v5 = vld [vmem:[#allocation11 + $0x9c] ss:$24 sps:$4 sm:$0xff]   ;;  %v5252_v6 = vld [vmem:[#allocation11 + $0x98] ss:$24 sps:$4 sm:$0xff]   ;;  %v5261_v9 = vld [vmem:[#allocation11 + $0xcc] ss:$24 sps:$4 sm:$0xff]   ;;  %v162_v24 = vlaneseq }
  0x76   :  { %540 = vmatpush1.bf16.msra.mxu1 %v4552_v25  ;;  %468 = vmatprep.subr.bf16.mxu0 %v4553_v26  ;;  %6370 = vst [vmem:[#allocation25_spill] sm:$0xff] %v5249_v5  ;;  %6371 = vst [vmem:[#allocation26_spill] sm:$0xff] %v5252_v6  ;;  %v5257_v7 = vld [vmem:[#allocation11 + $0xc4] ss:$24 sps:$4 sm:$0xff]   ;;  %v5259_v8 = vld [vmem:[#allocation11 + $0xc0] ss:$24 sps:$4 sm:$0xff]  }
  0x77   :  { %541 = vmatprep.subr.bf16.mxu1 %v4555_v27  ;;  %6372 = vst [vmem:[#allocation27_spill] sm:$0xff] %v5261_v9  ;;  %v5264_v10 = vld [vmem:[#allocation11 + $0xc8] ss:$24 sps:$4 sm:$0xff]   ;;  %v5269_v11 = vld [vmem:[#allocation11 + $0xf4] ss:$24 sps:$4 sm:$0xff]   ;;  %v5309_v25 = vshrl.u32 %v162_v24, 7 }
  0x78   :  { %6373 = vst [vmem:[#allocation28_spill] sm:$0xff] %v5264_v10  ;;  %v5271_v12 = vld [vmem:[#allocation11 + $0xf0] ss:$24 sps:$4 sm:$0xff]   ;;  %v5273_v13 = vld [vmem:[#allocation11 + $0xfc] ss:$24 sps:$4 sm:$0xff]   ;;  %s4982_s26 = scalar_lea.vmem %s4022_s1, 128 }
  0x79   :  { %469 = vmatpush1.bf16.msra.mxu0 %v4557_v28  ;;  %6374 = vst [vmem:[#allocation29_spill] sm:$0xff] %v5273_v13  ;;  %v5276_v14 = vld [vmem:[#allocation11 + $0xf8] ss:$24 sps:$4 sm:$0xff]   ;;  %v5281_v15 = vld [vmem:[#allocation11 + $0x124] ss:$24 sps:$4 sm:$0xff]   ;;  %6380 = vst [vmem:[#allocation35_spill] sm:$0xff] %v5309_v25  ;;  %p4983_p12 = scmp.ne.s32.totalorder %s4022_s1, %s4982_s26  ;;  %p4988_p0 = scmp.lt.s32.totalorder %s4982_s26, %s4982_s26 }
  0x7a   :  { %542 = vmatpush1.bf16.msra.mxu1 %v4558_v29  ;;  %470 = vmatprep.subr.bf16.mxu0 %v4559_v30  ;;  %6375 = vst [vmem:[#allocation30_spill] sm:$0xff] %v5276_v14  ;;  %v5283_v16 = vld [vmem:[#allocation11 + $0x120] ss:$24 sps:$4 sm:$0xff]   ;;  %v5285_v17 = vld [vmem:[#allocation11 + $0x12c] ss:$24 sps:$4 sm:$0xff]   ;;  %v6272_v26 = vsub.s32 0, %v5309_v25 }
  0x7b   :  { %543 = vmatprep.subr.bf16.mxu1 %v4561_v31  ;;  %6376 = vst [vmem:[#allocation31_spill] sm:$0xff] %v5285_v17  ;;  %v5288_v18 = vld [vmem:[#allocation11 + $0x128] ss:$24 sps:$4 sm:$0xff]   ;;  %v5293_v19 = vld [vmem:[#allocation11 + $0x154] ss:$24 sps:$4 sm:$0xff]   ;;  %v176_v28 = vsub.s32 3, %v5309_v25  ;;  %p4989_p1 = por %p4988_p0, %p4987_p13 }
  0x7c   :  { %6377 = vst [vmem:[#allocation32_spill] sm:$0xff] %v5288_v18  ;;  %v5295_v20 = vld [vmem:[#allocation11 + $0x150] ss:$24 sps:$4 sm:$0xff]   ;;  %v5299_v22 = vld [vmem:[#allocation11 + $0x15c] ss:$24 sps:$4 sm:$0xff]   ;;  %v172_v29 = vsub.s32 2, %v5309_v25 }
  0x7d   :  { %471 = vmatpush1.bf16.msra.mxu0 %v4563_v32  ;;  %v5297_v21 = vld [vmem:[#allocation11 + $0x158] ss:$24 sps:$4 sm:$0xff]   ;;  %6379 = vst [vmem:[#allocation34_spill] sm:$0xff] %v5299_v22  ;;  %v5302_v23 = vld [vmem:[#allocation11 + $0x14] ss:$24 sps:$4 sm:$0xff]   ;;  %v677_v30 = vadd.s32 8, %v5309_v25  ;;  %p4990_p2 = pnand %p4989_p1, %p4983_p12 }
  0x7e   :  { %544 = vmatpush1.bf16.msra.mxu1 %v4564_v33  ;;  %602 = vmatprep.subr.bf16.mxu0 %v4568_v34  ;;  %6378 = vst [vmem:[#allocation33_spill] sm:$0xff] %v5297_v21  ;;  %v5312_v27 = vld [vmem:[#allocation10] sm:$0x3f]  ;;  %v684_v32 = vand.u32 7, %v5309_v25  ;;  %v6273_v33 = vsub.s32 1, %v5309_v25 }
  0x7f   :  { %1068 = vmatprep.subr.bf16.mxu1 %v5209_v54  ;;  %v5320_v31 = vrot.slane %v5312_v27, %v6272_v26  ;;  %v5325_v34 = vrot.slane %v5312_v27, %v176_v28 }
  0x80   :  { %489 = vmatmul.mubr.bf16.vlgmr.msra.gmra.mrb[0].mxu0 %v4565_v35  ;;  %vm5335_vm0 = vcmp.lt.s32.totalorder %v684_v32, 4 }
  0x81   :  { %562 = vmatmul.mubr.bf16.vlgmr.msra.gmra.mrb[0].mxu1 %v4565_v35  ;;  %603 = vmatpush1.bf16.msra.mxu0 %v4566_v36  ;;  %v685_v36 = vand.u32 7, %v677_v30 }
  0x82   :  { %498 = vmatprep.mubr.bf16.mxu0 %v6274_v1  ;;  %604 = vmatprep.subr.bf16.mxu0 %v4571_v37 }
  0x83   :  { %571 = vmatprep.mubr.bf16.mxu1 %v6274_v1  ;;  %1069 = vmatpush1.bf16.msra.mxu1 %v5211_v55  ;;  %vm5352_vm1 = vcmp.lt.s32.totalorder %v685_v36, 4  ;;  %v6396_v36 = vmov 0 }
  0x84   :  { %1070 = vmatprep.subr.bf16.mxu1 %v5221_v58 }
  0x85   :  { %605 = vmatpush1.bf16.msra.mxu0 %v4569_v38 }
  0x86   :  { %606 = vmatprep.subr.bf16.mxu0 %v4575_v39 }
  0x87   :  { %1071 = vmatpush1.bf16.msra.mxu1 %v5223_v59 }
  0x88   :  { %499 = vmatmul.mubr.bf16.gmra.mrb[4].mxu0 %v4572_v40  ;;  %1072 = vmatprep.subr.bf16.mxu1 %v5233_v62 }
  0x89   :  { %572 = vmatmul.mubr.bf16.gmra.mrb[4].mxu1 %v4572_v40  ;;  %607 = vmatpush1.bf16.msra.mxu0 %v4573_v41 }
  0x8a   :  { %508 = vmatprep.mubr.bf16.mxu0 %v6274_v1  ;;  %608 = vmatprep.subr.bf16.mxu0 %v4578_v42 }
  0x8b   :  { %581 = vmatprep.mubr.bf16.mxu1 %v6274_v1  ;;  %1073 = vmatpush1.bf16.msra.mxu1 %v5235_v63 }
  0x8c   :  { %1074 = vmatprep.subr.bf16.mxu1 %v5245_v3 }
  0x8d   :  { %609 = vmatpush1.bf16.msra.mxu0 %v4576_v43  ;;  %v678_v43 = vadd.s32 16, %v5309_v25 }
  0x8e   :  { %610 = vmatprep.subr.bf16.mxu0 %v4582_v44  ;;  %v5343_v44 = vrot.slane %v5312_v27, %v6273_v33 }
  0x8f   :  { %1075 = vmatpush1.bf16.msra.mxu1 %v5247_v4  ;;  %v686_v32 = vand.u32 7, %v678_v43  ;;  %v680_v43 = vadd.s32 32, %v5309_v25 }
  0x90   :  { %509 = vmatmul.mubr.bf16.gmra.mrb[8].mxu0 %v4579_v45  ;;  %1076 = vmatprep.subr.bf16.mxu1 %v5257_v7 }
  0x91   :  { %582 = vmatmul.mubr.bf16.gmra.mrb[8].mxu1 %v4579_v45  ;;  %611 = vmatpush1.bf16.msra.mxu0 %v4580_v46  ;;  %vm5375_vm2 = vcmp.lt.s32.totalorder %v686_v32, 4 }
  0x92   :  { %518 = vmatprep.mubr.bf16.mxu0 %v6274_v1  ;;  %612 = vmatprep.subr.bf16.mxu0 %v4585_v47 }
  0x93   :  { %591 = vmatprep.mubr.bf16.mxu1 %v6274_v1  ;;  %1077 = vmatpush1.bf16.msra.mxu1 %v5259_v8 }
  0x94   :  { %1078 = vmatprep.subr.bf16.mxu1 %v5269_v11 }
  0x95   :  { %613 = vmatpush1.bf16.msra.mxu0 %v4583_v48 }
  0x96   :  { %614 = vmatprep.subr.bf16.mxu0 %v4589_v49 }
  0x97   :  { %1079 = vmatpush1.bf16.msra.mxu1 %v5271_v12 }
  0x98   :  { %519 = vmatmul.mubr.bf16.gmra.mrb[12].mxu0 %v4586_v50  ;;  %1080 = vmatprep.subr.bf16.mxu1 %v5281_v15 }
  0x99   :  { %592 = vmatmul.mubr.bf16.gmra.mrb[12].mxu1 %v4586_v50  ;;  %615 = vmatpush1.bf16.msra.mxu0 %v4587_v51 }
  0x9a   :  { %634 = vmatprep.mubr.bf16.mxu0 %v6274_v1  ;;  %616 = vmatprep.subr.bf16.mxu0 %v4592_v52 }
  0x9b   :  { %1100 = vmatprep.mubr.bf16.mxu1 %v6274_v1  ;;  %1081 = vmatpush1.bf16.msra.mxu1 %v5283_v16 }
  0x9c   :  { %1082 = vmatprep.subr.bf16.mxu1 %v5293_v19 }
  0x9d   :  { %617 = vmatpush1.bf16.msra.mxu0 %v4590_v53  ;;  %v679_v53 = vadd.s32 24, %v5309_v25 }
  0x9e   :  { %1109 = vmatprep.subr.bf16.mxu0 %v5213_v56 }
  0x9f   :  { %1083 = vmatpush1.bf16.msra.mxu1 %v5295_v20 }
  0xa0   :  { %635 = vmatmul.mubr.bf16.vlgmr.msra.gmra.mrb[16].mxu0 %v4565_v35  ;;  %1150 = vmatprep.subr.bf16.mxu1 %v5302_v23  ;;  %v5328_v35 = vrot.slane %v5312_v27, %v172_v29 }
  0xa1   :  { %644 = vmatprep.mubr.bf16.mxu0 %v6274_v1  ;;  %1110 = vmatpush1.bf16.msra.mxu0 %v5216_v57 }
  0xa2   :  { %1111 = vmatprep.subr.bf16.mxu0 %v5225_v60 }
  0xa5   :  { %1112 = vmatpush1.bf16.msra.mxu0 %v5228_v61 }
  0xa6   :  { %1113 = vmatprep.subr.bf16.mxu0 %v5237_v0 }
  0xa8   :  { %645 = vmatmul.mubr.bf16.gmra.mrb[20].mxu0 %v4572_v40 }
  0xa9   :  { %654 = vmatprep.mubr.bf16.mxu0 %v6274_v1  ;;  %1114 = vmatpush1.bf16.msra.mxu0 %v5240_v2 }
  0xaa   :  { %1115 = vmatprep.subr.bf16.mxu0 %v5249_v5  ;;  %v5497_v5 = vld [vmem:[#allocation13] sm:$0xff] }
  0xad   :  { %1116 = vmatpush1.bf16.msra.mxu0 %v5252_v6 }
  0xae   :  { %1117 = vmatprep.subr.bf16.mxu0 %v5261_v9 }
  0xb0   :  { %655 = vmatmul.mubr.bf16.gmra.mrb[24].mxu0 %v4579_v45 }
  0xb1   :  { %664 = vmatprep.mubr.bf16.mxu0 %v6274_v1  ;;  %1118 = vmatpush1.bf16.msra.mxu0 %v5264_v10 }
  0xb2   :  { %1119 = vmatprep.subr.bf16.mxu0 %v5273_v13 }
  0xb5   :  { %1120 = vmatpush1.bf16.msra.mxu0 %v5276_v14 }
  0xb6   :  { %1121 = vmatprep.subr.bf16.mxu0 %v5285_v17  ;;  %v6410_v17 = vmov 0 }
  0xb8   :  { %665 = vmatmul.mubr.bf16.gmra.mrb[28].mxu0 %v4586_v50 }
  0xb9   :  { %1141 = vmatprep.mubr.bf16.mxu0 %v6274_v1  ;;  %1122 = vmatpush1.bf16.msra.mxu0 %v5288_v18 }
  0xba   :  { %1123 = vmatprep.subr.bf16.mxu0 %v5299_v22 }
  0xbd   :  { %1124 = vmatpush1.bf16.msra.mxu0 %v5297_v21 }
  0xbe   :  { %1509 = vmatprep.subr.bf16.mxu0 %v5209_v54 }
 0x153   :  { %v490_v37 = vpop.f32.mrb[0].mxu0 }
 0x154   :  { %v5330_v38 = vpop.f32.mrb[0].mxu1  ;;  %v491_v39 = vadd.f32 %v490_v37, %v5320_v31  ;;  %v5333_v40 = vpop.f32.mrb[1].mxu0  ;;  %v687_v37 = vand.u32 7, %v679_v53 }
 0x155   :  { %v565_v41 = vpop.f32.mrb[1].mxu1  ;;  %v494_v46 = vpop.f32.mrb[2].mxu0 }
 0x156   :  { %v566_v45 = vadd.f32 %v565_v41, %v5325_v34  ;;  %v567_v47 = vpop.f32.mrb[2].mxu1  ;;  %v5347_v48 = vadd.f32 %v494_v46, %v5320_v31  ;;  %v496_v50 = vpop.f32.mrb[3].mxu0  ;;  %vm5392_vm3 = vcmp.lt.s32.totalorder %v687_v37, 4 }
 0x157   :  { %v5350_v49 = vadd.f32 %v567_v47, %v5328_v35  ;;  %v569_v51 = vpop.f32.mrb[3].mxu1  ;;  %v5360_v28 = vadd.f32 %v496_v50, %v5343_v44  ;;  %v6397_v36 = vsel %vm5392_vm3, 4294967295, %v6396_v36 }
 0x158   :  { %6383 = vst [vmem:[#allocation36_spill] sm:$0xff] %v5347_v48  ;;  %v700_v24 = vsel %vm5335_vm0, %v491_v39, %v566_v45  ;;  %v5363_v29 = vadd.f32 %v569_v51, %v5325_v34  ;;  %v6389_v51 = vmov 0  ;;  %6398 = vst [vmem:[#allocation45_spill] sm:$0xff] %v6397_v36 }
 0x159   :  { %v4101_v30 = vmul.f32 -1.442695, %v700_v24  ;;  %v6390_v51 = vsel %vm5375_vm2, 4294967295, %v6389_v51 }
 0x15a   :  { %6386 = vst [vmem:[#allocation37_spill] sm:$0xff] %v5363_v29  ;;  %6391 = vst [vmem:[#allocation40_spill] sm:$0xff] %v6390_v51 }
 0x15b   :  { %4791 = vpow2.f32 %v4101_v30  ;;  %v500_v41 = vpop.f32.mrb[4].mxu0 }
 0x15c   :  { %v573_v46 = vpop.f32.mrb[4].mxu1  ;;  %v5370_v47 = vadd.f32 %v500_v41, %v5320_v31  ;;  %v502_v45 = vpop.f32.mrb[5].mxu0 }
 0x15d   :  { %v5373_v39 = vadd.f32 %v573_v46, %v5328_v35  ;;  %v575_v50 = vpop.f32.mrb[5].mxu1  ;;  %v5381_v24 = vadd.f32 %v502_v45, %v5343_v44  ;;  %v504_v30 = vpop.f32.mrb[6].mxu0  ;;  %v681_v45 = vadd.s32 40, %v5309_v25 }
 0x15e   :  { %6387 = vst [vmem:[#allocation38_spill] sm:$0xff] %v5370_v47  ;;  %v5384_v53 = vadd.f32 %v575_v50, %v5325_v34  ;;  %v577_v41 = vpop.f32.mrb[6].mxu1  ;;  %v5387_v26 = vadd.f32 %v504_v30, %v5320_v31  ;;  %v506_v32 = vpop.f32.mrb[7].mxu0  ;;  %v6403_v30 = vmov 0 }
 0x15f   :  { %6388 = vst [vmem:[#allocation39_spill] sm:$0xff] %v5373_v39  ;;  %6392 = vst [vmem:[#allocation41_spill] sm:$0xff] %v5381_v24  ;;  %v5390_v46 = vadd.f32 %v577_v41, %v5328_v35  ;;  %v579_v33 = vpop.f32.mrb[7].mxu1  ;;  %v5398_v1 = vadd.f32 %v506_v32, %v5343_v44  ;;  %v688_v41 = vand.u32 7, %v680_v43  ;;  %v689_v29 = vand.u32 7, %v681_v45 }
 0x160   :  { %6393 = vst [vmem:[#allocation42_spill] sm:$0xff] %v5384_v53  ;;  %6394 = vst [vmem:[#allocation43_spill] sm:$0xff] %v5387_v26  ;;  %v5401_v50 = vadd.f32 %v579_v33, %v5325_v34  ;;  %v682_v43 = vadd.s32 48, %v5309_v25 }
 0x161   :  { %6395 = vst [vmem:[#allocation44_spill] sm:$0xff] %v5390_v46  ;;  %6399 = vst [vmem:[#allocation46_spill] sm:$0xff] %v5398_v1  ;;  %vm5417_vm4 = vcmp.lt.s32.totalorder %v688_v41, 4  ;;  %vm5434_vm5 = vcmp.lt.s32.totalorder %v689_v29, 4  ;;  %v6454_v46 = vld [vmem:[#allocation23_spill] sm:$0xff] }
 0x162   :  { %6400 = vst [vmem:[#allocation47_spill] sm:$0xff] %v5401_v50  ;;  %v6404_v30 = vsel %vm5417_vm4, 4294967295, %v6403_v30  ;;  %v6411_v17 = vsel %vm5434_vm5, 4294967295, %v6410_v17 }
 0x163   :  { %v510_v48 = vpop.f32.mrb[8].mxu0  ;;  %6405 = vst [vmem:[#allocation50_spill] sm:$0xff] %v6404_v30  ;;  %6412 = vst [vmem:[#allocation55_spill] sm:$0xff] %v6411_v17  ;;  %v6446_v17 = vld [vmem:[#allocation27_spill] sm:$0xff]  ;;  %v6452_v30 = vld [vmem:[#allocation34_spill] sm:$0xff] }
 0x164   :  { %v583_v54 = vpop.f32.mrb[8].mxu1  ;;  %v5412_v32 = vadd.f32 %v510_v48, %v5320_v31  ;;  %v512_v22 = vpop.f32.mrb[9].mxu0 }
 0x165   :  { %v4792_v21 = vpop.eup %4791  ;;  %v5415_v33 = vadd.f32 %v583_v54, %v5328_v35  ;;  %v585_v18 = vpop.f32.mrb[9].mxu1  ;;  %v5423_v45 = vadd.f32 %v512_v22, %v5343_v44 }
 0x166   :  { %6401 = vst [vmem:[#allocation48_spill] sm:$0xff] %v5412_v32  ;;  %v757_v53 = vadd.f32 1.0, %v4792_v21  ;;  %v5426_v37 = vadd.f32 %v585_v18, %v5325_v34  ;;  %v514_v48 = vpop.f32.mrb[10].mxu0  ;;  %v587_v50 = vpop.f32.mrb[10].mxu1  ;;  %v683_v21 = vadd.s32 56, %v5309_v25  ;;  %v6424_v32 = vmov 0 }
 0x167   :  { %6402 = vst [vmem:[#allocation49_spill] sm:$0xff] %v5415_v33  ;;  %6406 = vst [vmem:[#allocation51_spill] sm:$0xff] %v5423_v45  ;;  %v5429_v54 = vadd.f32 %v514_v48, %v5320_v31  ;;  %v5432_v26 = vadd.f32 %v587_v50, %v5328_v35  ;;  %v516_v41 = vpop.f32.mrb[11].mxu0  ;;  %v589_v47 = vpop.f32.mrb[11].mxu1  ;;  %v690_v48 = vand.u32 7, %v682_v43  ;;  %v180_v50 = vsub.s32 4, %v5309_v25 }
 0x168   :  { %6407 = vst [vmem:[#allocation52_spill] sm:$0xff] %v5426_v37  ;;  %v5440_v22 = vadd.f32 %v516_v41, %v5343_v44  ;;  %v5443_v18 = vadd.f32 %v589_v47, %v5325_v34  ;;  %4793 = vrcp.f32 %v757_v53  ;;  %v691_v14 = vand.u32 7, %v683_v21  ;;  %v6449_v33 = vld [vmem:[#allocation30_spill] sm:$0xff]  ;;  %v6451_v45 = vld [vmem:[#allocation32_spill] sm:$0xff] }
 0x169   :  { %6408 = vst [vmem:[#allocation53_spill] sm:$0xff] %v5429_v54  ;;  %6409 = vst [vmem:[#allocation54_spill] sm:$0xff] %v5432_v26  ;;  %vm5460_vm6 = vcmp.lt.s32.totalorder %v690_v48, 4  ;;  %v6417_v53 = vmov 0 }
 0x16a   :  { %6413 = vst [vmem:[#allocation56_spill] sm:$0xff] %v5440_v22  ;;  %6414 = vst [vmem:[#allocation57_spill] sm:$0xff] %v5443_v18  ;;  %v6418_v53 = vsel %vm5460_vm6, 4294967295, %v6417_v53  ;;  %v184_v18 = vsub.s32 5, %v5309_v25  ;;  %vm5477_vm7 = vcmp.lt.s32.totalorder %v691_v14, 4  ;;  %v6445_v22 = vld [vmem:[#allocation26_spill] sm:$0xff] }
 0x16b   :  { %v520_v13 = vpop.f32.mrb[12].mxu0  ;;  %6419 = vst [vmem:[#allocation60_spill] sm:$0xff] %v6418_v53  ;;  %v6425_v32 = vsel %vm5477_vm7, 4294967295, %v6424_v32  ;;  %v6443_v53 = vld [vmem:[#allocation24_spill] sm:$0xff] }
 0x16c   :  { %v593_v10 = vpop.f32.mrb[12].mxu1  ;;  %v5454_v41 = vadd.f32 %v520_v13, %v5320_v31  ;;  %v522_v9 = vpop.f32.mrb[13].mxu0  ;;  %6426 = vst [vmem:[#allocation65_spill] sm:$0xff] %v6425_v32  ;;  %v5643_v32 = vld [vmem:[#allocation11 + $0x130] ss:$24 sps:$4 sm:$0xff]  }
 0x16d   :  { %v5457_v47 = vadd.f32 %v593_v10, %v5328_v35  ;;  %v595_v6 = vpop.f32.mrb[13].mxu1  ;;  %v5465_v43 = vadd.f32 %v522_v9, %v5343_v44  ;;  %v524_v29 = vpop.f32.mrb[14].mxu0 }
 0x16e   :  { %6415 = vst [vmem:[#allocation58_spill] sm:$0xff] %v5454_v41  ;;  %v5468_v21 = vadd.f32 %v595_v6, %v5325_v34  ;;  %v597_v13 = vpop.f32.mrb[14].mxu1  ;;  %v5472_v10 = vadd.f32 %v524_v29, %v5320_v31  ;;  %v526_v48 = vpop.f32.mrb[15].mxu0  ;;  %v181_v29 = vrot.slane %v5312_v27, %v180_v50  ;;  %v564_v31 = vadd.f32 %v5330_v38, %v5328_v35 }
 0x16f   :  { %6416 = vst [vmem:[#allocation59_spill] sm:$0xff] %v5457_v47  ;;  %6420 = vst [vmem:[#allocation61_spill] sm:$0xff] %v5465_v43  ;;  %v5475_v54 = vadd.f32 %v597_v13, %v5328_v35  ;;  %v599_v37 = vpop.f32.mrb[15].mxu1  ;;  %v5482_v9 = vadd.f32 %v526_v48, %v5343_v44  ;;  %v185_v13 = vrot.slane %v5312_v27, %v184_v18  ;;  %v5651_v47 = vld [vmem:[#allocation11 + $0x160] ss:$24 sps:$4 sm:$0xff]  }
 0x170   :  { %6421 = vst [vmem:[#allocation62_spill] sm:$0xff] %v5468_v21  ;;  %6422 = vst [vmem:[#allocation63_spill] sm:$0xff] %v5472_v10  ;;  %v5485_v6 = vadd.f32 %v599_v37, %v5325_v34  ;;  %v493_v34 = vadd.f32 %v5333_v40, %v5343_v44 }
 0x171   :  { %6423 = vst [vmem:[#allocation64_spill] sm:$0xff] %v5475_v54  ;;  %6427 = vst [vmem:[#allocation66_spill] sm:$0xff] %v5482_v9  ;;  %v5635_v54 = vld [vmem:[#allocation11 + $0x100] ss:$24 sps:$4 sm:$0xff]   ;;  %v5638_v9 = vld [vmem:[#allocation11 + $0x134] ss:$24 sps:$4 sm:$0xff]  }
 0x172   :  { %6428 = vst [vmem:[#allocation67_spill] sm:$0xff] %v5485_v6  ;;  %v4794_v25 = vpop.eup %4793 }
 0x173   :  { %v636_v48 = vpop.f32.mrb[16].mxu0  ;;  %v768_v18 = vmul.f32 %v4794_v25, %v5497_v5 }
 0x174   :  { %v637_v37 = vadd.f32 %v636_v48, %v181_v29  ;;  %v638_v2 = vpop.f32.mrb[17].mxu0 }
 0x175   :  { %v639_v50 = vadd.f32 %v638_v2, %v185_v13  ;;  %v640_v21 = vpop.f32.mrb[18].mxu0 }
 0x176   :  { %v701_v27 = vsel %vm5335_vm0, %v493_v34, %v637_v37  ;;  %v5506_v14 = vadd.f32 %v640_v21, %v181_v29  ;;  %v642_v6 = vpop.f32.mrb[19].mxu0 }
 0x177   :  { %v4102_v10 = vmul.f32 -1.442695, %v701_v27  ;;  %v702_v41 = vsel %vm5335_vm0, %v564_v31, %v639_v50  ;;  %v5510_v40 = vadd.f32 %v642_v6, %v185_v13 }
 0x178   :  { %v769_v44 = vadd.f32 %v768_v18, %v702_v41 }
 0x179   :  { %4795 = vpow2.f32 %v4102_v10 }
 0x17b   :  { %v646_v35 = vpop.f32.mrb[20].mxu0 }
 0x17c   :  { %v5520_v38 = vadd.f32 %v646_v35, %v181_v29  ;;  %v648_v21 = vpop.f32.mrb[21].mxu0 }
 0x17d   :  { %v5522_v42 = vadd.f32 %v648_v21, %v185_v13  ;;  %v650_v6 = vpop.f32.mrb[22].mxu0 }
 0x17e   :  { %6429 = vst [vmem:[#allocation68_spill] sm:$0xff] %v5520_v38  ;;  %v5524_v31 = vadd.f32 %v650_v6, %v181_v29  ;;  %v652_v41 = vpop.f32.mrb[23].mxu0 }
 0x17f   :  { %6430 = vst [vmem:[#allocation69_spill] sm:$0xff] %v5522_v42  ;;  %v5534_v34 = vadd.f32 %v652_v41, %v185_v13 }
 0x180   :  { %6431 = vst [vmem:[#allocation70_spill] sm:$0xff] %v5524_v31  ;;  %v6455_v31 = vld [vmem:[#allocation35_spill] sm:$0xff] }
 0x181   :  { %6432 = vst [vmem:[#allocation71_spill] sm:$0xff] %v5534_v34  ;;  %v6453_v34 = vld [vmem:[#allocation33_spill] sm:$0xff]  ;;  %vm748_vm8 = vcmp.lt.s32.totalorder %v6455_v31, 4 }
 0x183   :  { %v4796_v27 = vpop.eup %4795  ;;  %v656_v18 = vpop.f32.mrb[24].mxu0 }
 0x184   :  { %v764_v35 = vadd.f32 1.0, %v4796_v27  ;;  %v5544_v21 = vadd.f32 %v656_v18, %v181_v29  ;;  %v658_v6 = vpop.f32.mrb[25].mxu0 }
 0x185   :  { %v5546_v10 = vadd.f32 %v658_v6, %v185_v13  ;;  %v660_v41 = vpop.f32.mrb[26].mxu0  ;;  %v5594_v6 = vld [vmem:[#allocation11 + $0x10] ss:$24 sps:$4 sm:$0xff]  }
 0x186   :  { %6433 = vst [vmem:[#allocation72_spill] sm:$0xff] %v5544_v21  ;;  %4797 = vrcp.f32 %v764_v35  ;;  %v5548_v48 = vadd.f32 %v660_v41, %v181_v29  ;;  %v662_v25 = vpop.f32.mrb[27].mxu0  ;;  %v6450_v21 = vld [vmem:[#allocation31_spill] sm:$0xff] }
 0x187   :  { %6434 = vst [vmem:[#allocation73_spill] sm:$0xff] %v5546_v10  ;;  %v5558_v18 = vadd.f32 %v662_v25, %v185_v13  ;;  %4799 = vtanh.f32 %v769_v44  ;;  %v6447_v10 = vld [vmem:[#allocation28_spill] sm:$0xff] }
 0x188   :  { %6435 = vst [vmem:[#allocation74_spill] sm:$0xff] %v5548_v48  ;;  %v6444_v48 = vld [vmem:[#allocation25_spill] sm:$0xff] }
 0x189   :  { %6436 = vst [vmem:[#allocation75_spill] sm:$0xff] %v5558_v18 }
 0x18b   :  { %v666_v41 = vpop.f32.mrb[28].mxu0 }
 0x18c   :  { %v5568_v37 = vadd.f32 %v666_v41, %v181_v29  ;;  %v668_v50 = vpop.f32.mrb[29].mxu0 }
 0x18d   :  { %v5570_v2 = vadd.f32 %v668_v50, %v185_v13  ;;  %v670_v27 = vpop.f32.mrb[30].mxu0 }
 0x18e   :  { %6437 = vst [vmem:[#allocation76_spill] sm:$0xff] %v5568_v37  ;;  %v5572_v25 = vadd.f32 %v670_v27, %v181_v29  ;;  %v672_v44 = vpop.f32.mrb[31].mxu0  ;;  %v5601_v29 = vld [vmem:[#allocation11 + $0x40] ss:$24 sps:$4 sm:$0xff]   ;;  %v5627_v27 = vld [vmem:[#allocation11 + $0xd0] ss:$24 sps:$4 sm:$0xff]  }
 0x18f   :  { %6438 = vst [vmem:[#allocation77_spill] sm:$0xff] %v5570_v2  ;;  %v5582_v18 = vadd.f32 %v672_v44, %v185_v13  ;;  %v5598_v44 = vld [vmem:[#allocation11 + $0x44] ss:$24 sps:$4 sm:$0xff]  }
 0x190   :  { %6439 = vst [vmem:[#allocation78_spill] sm:$0xff] %v5572_v25  ;;  %v4798_v41 = vpop.eup %4797  ;;  %v6442_v25 = vmov 0   ;;  %v5646_v2 = vld [vmem:[#allocation11 + $0x164] ss:$24 sps:$4 sm:$0xff]  }
 0x191   :  { %6440 = vst [vmem:[#allocation79_spill] sm:$0xff] %v5582_v18  ;;  %v771_v50 = vsub.f32 1.0, %v4798_v41  ;;  %v4800_v35 = vpop.eup %4799  ;;  %v773_v43 = vmul.f32 0.0, %v4798_v41  ;;  %v5619_v41 = vld [vmem:[#allocation11 + $0xa0] ss:$24 sps:$4 sm:$0xff]  }
 0x192   :  { %v5630_v18 = vld [vmem:[#allocation11 + $0x104] ss:$24 sps:$4 sm:$0xff]  }
 0x193   :  { %v772_v37 = vmul.f32 %v4800_v35, %v771_v50  ;;  %v5605_v35 = vld [vmem:[#allocation11 + $0x74] ss:$24 sps:$4 sm:$0xff]  }
 0x194   :  { %v5622_v50 = vld [vmem:[#allocation11 + $0xd4] ss:$24 sps:$4 sm:$0xff]  }
 0x195   :  { %v5592_v26 = vadd.f32 %v773_v43, %v772_v37  ;;  %v5611_v43 = vld [vmem:[#allocation11 + $0x70] ss:$24 sps:$4 sm:$0xff]   ;;  %v5614_v37 = vld [vmem:[#allocation11 + $0xa4] ss:$24 sps:$4 sm:$0xff]  }
 0x197   :  { %6441 = vst [vmem:[#allocation80_spill] sm:$0xff] %v5592_v26  ;;  %v779_v13 = vpack.c.bf16 %v5592_v26, %v5592_v26 }
 0x199   :  { %1101 = vmatmul.mubr.bf16.vlgmr.msra.gmra.mrb[16].mxu1 %v779_v13  ;;  %1142 = vmatmul.mubr.bf16.vlgmr.msra.gmra.mrb[32].mxu0 %v779_v13 }
 0x19a   :  { %1151 = vmatpush1.bf16.msra.mxu1 %v5594_v6  ;;  %1182 = vmatprep.mubr.bf16.mxu1 %v6442_v25 }
 0x19b   :  { %1152 = vmatprep.subr.bf16.mxu1 %v5598_v44  ;;  %1510 = vmatpush1.bf16.msra.mxu0 %v5211_v55 }
 0x19c   :  { %1511 = vmatprep.subr.bf16.mxu0 %v5221_v58  ;;  %1541 = vmatprep.mubr.bf16.mxu0 %v6442_v25 }
 0x19e   :  { %1153 = vmatpush1.bf16.msra.mxu1 %v5601_v29 }
 0x19f   :  { %1154 = vmatprep.subr.bf16.mxu1 %v5605_v35  ;;  %1512 = vmatpush1.bf16.msra.mxu0 %v5223_v59 }
 0x1a0   :  { %1513 = vmatprep.subr.bf16.mxu0 %v5233_v62 }
 0x1a2   :  { %1155 = vmatpush1.bf16.msra.mxu1 %v5611_v43 }
 0x1a3   :  { %1156 = vmatprep.subr.bf16.mxu1 %v5614_v37  ;;  %1514 = vmatpush1.bf16.msra.mxu0 %v5235_v63 }
 0x1a4   :  { %1515 = vmatprep.subr.bf16.mxu0 %v5245_v3 }
 0x1a6   :  { %1157 = vmatpush1.bf16.msra.mxu1 %v5619_v41 }
 0x1a7   :  { %1158 = vmatprep.subr.bf16.mxu1 %v5622_v50  ;;  %1516 = vmatpush1.bf16.msra.mxu0 %v5247_v4 }
 0x1a8   :  { %1517 = vmatprep.subr.bf16.mxu0 %v5257_v7 }
 0x1aa   :  { %1159 = vmatpush1.bf16.msra.mxu1 %v5627_v27 }
 0x1ab   :  { %1160 = vmatprep.subr.bf16.mxu1 %v5630_v18  ;;  %1518 = vmatpush1.bf16.msra.mxu0 %v5259_v8 }
 0x1ac   :  { %1519 = vmatprep.subr.bf16.mxu0 %v5269_v11 }
 0x1ae   :  { %1161 = vmatpush1.bf16.msra.mxu1 %v5635_v54 }
 0x1af   :  { %1162 = vmatprep.subr.bf16.mxu1 %v5638_v9  ;;  %1520 = vmatpush1.bf16.msra.mxu0 %v5271_v12 }
 0x1b0   :  { %1521 = vmatprep.subr.bf16.mxu0 %v5281_v15 }
 0x1b2   :  { %1163 = vmatpush1.bf16.msra.mxu1 %v5643_v32 }
 0x1b3   :  { %1164 = vmatprep.subr.bf16.mxu1 %v5646_v2  ;;  %1522 = vmatpush1.bf16.msra.mxu0 %v5283_v16 }
 0x1b4   :  { %1523 = vmatprep.subr.bf16.mxu0 %v5293_v19 }
 0x1b6   :  { %1165 = vmatpush1.bf16.msra.mxu1 %v5651_v47 }
 0x1b7   :  { %1550 = vmatprep.subr.bf16.mxu1 %v5213_v56  ;;  %1524 = vmatpush1.bf16.msra.mxu0 %v5295_v20 }
 0x1b8   :  { %1591 = vmatprep.subr.bf16.mxu0 %v5302_v23 }
 0x1b9   :  { %1183 = vmatmul.mubr.bf16.vlgmr.msra.gmra.mrb[20].mxu1 %v779_v13  ;;  %v6448_v13 = vld [vmem:[#allocation29_spill] sm:$0xff] }
 0x1ba   :  { %1551 = vmatpush1.bf16.msra.mxu1 %v5216_v57  ;;  %1582 = vmatprep.mubr.bf16.mxu1 %v6442_v25 }
 0x1bb   :  { %1552 = vmatprep.subr.bf16.mxu1 %v5225_v60 }
 0x1be   :  { %1553 = vmatpush1.bf16.msra.mxu1 %v5228_v61 }
 0x1bf   :  { %1554 = vmatprep.subr.bf16.mxu1 %v5237_v0 }
 0x1c2   :  { %1555 = vmatpush1.bf16.msra.mxu1 %v6443_v53 }
 0x1c3   :  { %1556 = vmatprep.subr.bf16.mxu1 %v6444_v48 }
 0x1c6   :  { %1557 = vmatpush1.bf16.msra.mxu1 %v6445_v22 }
 0x1c7   :  { %1558 = vmatprep.subr.bf16.mxu1 %v6446_v17 }
 0x1ca   :  { %1559 = vmatpush1.bf16.msra.mxu1 %v6447_v10 }
 0x1cb   :  { %1560 = vmatprep.subr.bf16.mxu1 %v6448_v13 }
 0x1ce   :  { %1561 = vmatpush1.bf16.msra.mxu1 %v6449_v33 }
 0x1cf   :  { %1562 = vmatprep.subr.bf16.mxu1 %v6450_v21  ;;  %v6457_v21 = vld [vmem:[#allocation37_spill] sm:$0xff] }
 0x1d2   :  { %1563 = vmatpush1.bf16.msra.mxu1 %v6451_v45  ;;  %v6456_v45 = vld [vmem:[#allocation36_spill] sm:$0xff] }
 0x1d3   :  { %1564 = vmatprep.subr.bf16.mxu1 %v6452_v30  ;;  %v6458_v30 = vsel %vm5352_vm1, %v6456_v45, %v6457_v21 }
 0x1d6   :  { %1565 = vmatpush1.bf16.msra.mxu1 %v6453_v34 }
 0x1d7   :  { %1950 = vmatprep.subr.bf16.mxu1 %v6454_v46 }
 0x26c   :  { %v1102_v1 = vpop.f32.mrb[16].mxu1  ;;  %v1143_v36 = vpop.f32.mrb[32].mxu0 }
 0x26d   :  { %v1104_v42 = vpop.f32.mrb[17].mxu1  ;;  %v1145_v39 = vpop.f32.mrb[33].mxu0 }
 0x26e   :  { %v1191_v38 = vsel %vm748_vm8, %v1102_v1, %v1145_v39  ;;  %v1106_v24 = vpop.f32.mrb[18].mxu1  ;;  %v1147_v51 = vpop.f32.mrb[34].mxu0  ;;  %v6459_v39 = vsel %vm5352_vm1, %v5360_v28, %v5506_v14 }
 0x26f   :  { %v1194_v33 = vadd.f32 %v1191_v38, %v6458_v30  ;;  %v1107_v34 = vpop.f32.mrb[19].mxu1  ;;  %v1148_v13 = vpop.f32.mrb[35].mxu0 }
 0x271   :  { %v4151_v46 = vmul.f32 -1.442695, %v1194_v33 }
 0x273   :  { %4801 = vpow2.f32 %v4151_v46 }
 0x27d   :  { %v4802_v10 = vpop.eup %4801 }
 0x27e   :  { %v1198_v17 = vadd.f32 1.0, %v4802_v10 }
 0x280   :  { %4803 = vrcp.f32 %v1198_v17 }
 0x28a   :  { %v4804_v38 = vpop.eup %4803 }
 0x28c   :  { %v1184_v22 = vpop.f32.mrb[20].mxu1 }
 0x28d   :  { %v1192_v48 = vsel %vm748_vm8, %v1104_v42, %v1184_v22  ;;  %v1186_v1 = vpop.f32.mrb[21].mxu1  ;;  %v6460_v22 = vsel %vm5352_vm1, %v5350_v49, %v5510_v40 }
 0x28e   :  { %v1201_v51 = vadd.f32 %v1192_v48, %v6459_v39  ;;  %v1193_v24 = vsel %vm748_vm8, %v1143_v36, %v1186_v1  ;;  %v1188_v30 = vpop.f32.mrb[22].mxu1 }
 0x28f   :  { %v1208_v33 = vadd.f32 %v1193_v24, %v5497_v5  ;;  %v1189_v45 = vpop.f32.mrb[23].mxu1 }
 0x290   :  { %v4152_v17 = vmul.f32 -1.442695, %v1201_v51  ;;  %v6476_v45 = vld [vmem:[#allocation41_spill] sm:$0xff] }
 0x291   :  { %v1209_v10 = vmul.f32 %v4804_v38, %v1208_v33  ;;  %v6477_v38 = vld [vmem:[#allocation68_spill] sm:$0xff] }
 0x292   :  { %4805 = vpow2.f32 %v4152_v17  ;;  %v6478_v17 = vsel %vm5375_vm2, %v6476_v45, %v6477_v38 }
 0x293   :  { %v1210_v42 = vadd.f32 %v1209_v10, %v6460_v22 }
 0x29c   :  { %v4806_v34 = vpop.eup %4805 }
 0x29d   :  { %v1205_v28 = vadd.f32 1.0, %v4806_v34 }
 0x29f   :  { %4807 = vrcp.f32 %v1205_v28 }
 0x2a0   :  { %4809 = vtanh.f32 %v1210_v42 }
 0x2a9   :  { %v4808_v14 = vpop.eup %4807 }
 0x2aa   :  { %v1212_v36 = vsub.f32 1.0, %v4808_v14  ;;  %v4810_v48 = vpop.eup %4809  ;;  %v1214_v13 = vmul.f32 %v4808_v14, %v5592_v26 }
 0x2ac   :  { %v1213_v21 = vmul.f32 %v4810_v48, %v1212_v36 }
 0x2ae   :  { %v5701_v46 = vadd.f32 %v1214_v13, %v1213_v21  ;;  %v6479_v21 = vld [vmem:[#allocation39_spill] sm:$0xff]  ;;  %v6480_v13 = vld [vmem:[#allocation69_spill] sm:$0xff] }
 0x2b0   :  { %6461 = vst [vmem:[#allocation24_spill] sm:$0xff] %v5701_v46  ;;  %v1220_v1 = vpack.c.bf16 %v5701_v46, %v5701_v46 }
 0x2b2   :  { %1542 = vmatmul.mubr.bf16.vlgmr.msra.gmra.mrb[36].mxu0 %v1220_v1  ;;  %1583 = vmatmul.mubr.bf16.vlgmr.msra.gmra.mrb[24].mxu1 %v1220_v1 }
 0x2b3   :  { %1592 = vmatpush1.bf16.msra.mxu0 %v5594_v6  ;;  %1623 = vmatprep.mubr.bf16.mxu0 %v6442_v25 }
 0x2b4   :  { %1593 = vmatprep.subr.bf16.mxu0 %v5598_v44  ;;  %1951 = vmatpush1.bf16.msra.mxu1 %v5211_v55  ;;  %v6462_v55 = vld [vmem:[#allocation25_spill] sm:$0xff] }
 0x2b5   :  { %1952 = vmatprep.subr.bf16.mxu1 %v5221_v58  ;;  %1982 = vmatprep.mubr.bf16.mxu1 %v6442_v25  ;;  %v6464_v58 = vld [vmem:[#allocation27_spill] sm:$0xff] }
 0x2b7   :  { %1594 = vmatpush1.bf16.msra.mxu0 %v5601_v29 }
 0x2b8   :  { %1595 = vmatprep.subr.bf16.mxu0 %v5605_v35  ;;  %1953 = vmatpush1.bf16.msra.mxu1 %v5223_v59  ;;  %v6465_v59 = vld [vmem:[#allocation28_spill] sm:$0xff] }
 0x2b9   :  { %1954 = vmatprep.subr.bf16.mxu1 %v5233_v62  ;;  %v6466_v62 = vld [vmem:[#allocation29_spill] sm:$0xff] }
 0x2bb   :  { %1596 = vmatpush1.bf16.msra.mxu0 %v5611_v43 }
 0x2bc   :  { %1597 = vmatprep.subr.bf16.mxu0 %v5614_v37  ;;  %1955 = vmatpush1.bf16.msra.mxu1 %v5235_v63  ;;  %v6468_v63 = vld [vmem:[#allocation31_spill] sm:$0xff] }
 0x2bd   :  { %1956 = vmatprep.subr.bf16.mxu1 %v5245_v3 }
 0x2bf   :  { %1598 = vmatpush1.bf16.msra.mxu0 %v5619_v41 }
 0x2c0   :  { %1599 = vmatprep.subr.bf16.mxu0 %v5622_v50  ;;  %1957 = vmatpush1.bf16.msra.mxu1 %v5247_v4 }
 0x2c1   :  { %1958 = vmatprep.subr.bf16.mxu1 %v5257_v7 }
 0x2c3   :  { %1600 = vmatpush1.bf16.msra.mxu0 %v5627_v27 }
 0x2c4   :  { %1601 = vmatprep.subr.bf16.mxu0 %v5630_v18  ;;  %1959 = vmatpush1.bf16.msra.mxu1 %v5259_v8 }
 0x2c5   :  { %1960 = vmatprep.subr.bf16.mxu1 %v5269_v11 }
 0x2c7   :  { %1602 = vmatpush1.bf16.msra.mxu0 %v5635_v54 }
 0x2c8   :  { %1603 = vmatprep.subr.bf16.mxu0 %v5638_v9  ;;  %1961 = vmatpush1.bf16.msra.mxu1 %v5271_v12 }
 0x2c9   :  { %1962 = vmatprep.subr.bf16.mxu1 %v5281_v15 }
 0x2cb   :  { %1604 = vmatpush1.bf16.msra.mxu0 %v5643_v32 }
 0x2cc   :  { %1605 = vmatprep.subr.bf16.mxu0 %v5646_v2  ;;  %1963 = vmatpush1.bf16.msra.mxu1 %v5283_v16  ;;  %v5863_v16 = vld [vmem:[#allocation11 + $0xf0] ss:$24 sps:$4 sm:$0xff]  }
 0x2cd   :  { %1964 = vmatprep.subr.bf16.mxu1 %v5293_v19  ;;  %v6473_v19 = vld [vmem:[#allocation38_spill] sm:$0xff] }
 0x2cf   :  { %1606 = vmatpush1.bf16.msra.mxu0 %v5651_v47 }
 0x2d0   :  { %1991 = vmatprep.subr.bf16.mxu0 %v5213_v56  ;;  %1965 = vmatpush1.bf16.msra.mxu1 %v5295_v20  ;;  %v6463_v56 = vld [vmem:[#allocation26_spill] sm:$0xff] }
 0x2d1   :  { %2032 = vmatprep.subr.bf16.mxu1 %v5302_v23  ;;  %v6474_v20 = vld [vmem:[#allocation42_spill] sm:$0xff] }
 0x2d2   :  { %1624 = vmatmul.mubr.bf16.vlgmr.msra.gmra.mrb[40].mxu0 %v1220_v1  ;;  %v6475_v23 = vsel %vm5375_vm2, %v6473_v19, %v6474_v20  ;;  %v6481_v1 = vsel %vm5375_vm2, %v6479_v21, %v6480_v13  ;;  %v5867_v19 = vld [vmem:[#allocation11 + $0xf8] ss:$24 sps:$4 sm:$0xff]   ;;  %v5869_v20 = vld [vmem:[#allocation11 + $0x124] ss:$24 sps:$4 sm:$0xff]  }
 0x2d3   :  { %1992 = vmatpush1.bf16.msra.mxu0 %v5216_v57  ;;  %2023 = vmatprep.mubr.bf16.mxu0 %v6442_v25  ;;  %v6467_v57 = vld [vmem:[#allocation30_spill] sm:$0xff]  ;;  %6485 = vst [vmem:[#allocation37_spill] sm:$0xff] %v5867_v19 }
 0x2d4   :  { %1993 = vmatprep.subr.bf16.mxu0 %v5225_v60  ;;  %v6469_v60 = vld [vmem:[#allocation32_spill] sm:$0xff] }
 0x2d7   :  { %1994 = vmatpush1.bf16.msra.mxu0 %v5228_v61  ;;  %v6470_v61 = vld [vmem:[#allocation34_spill] sm:$0xff] }
 0x2d8   :  { %1995 = vmatprep.subr.bf16.mxu0 %v5237_v0  ;;  %v6471_v0 = vld [vmem:[#allocation33_spill] sm:$0xff] }
 0x2db   :  { %1996 = vmatpush1.bf16.msra.mxu0 %v6443_v53 }
 0x2dc   :  { %1997 = vmatprep.subr.bf16.mxu0 %v6462_v55 }
 0x2df   :  { %1998 = vmatpush1.bf16.msra.mxu0 %v6463_v56 }
 0x2e0   :  { %1999 = vmatprep.subr.bf16.mxu0 %v6464_v58 }
 0x2e3   :  { %2000 = vmatpush1.bf16.msra.mxu0 %v6465_v59 }
 0x2e4   :  { %2001 = vmatprep.subr.bf16.mxu0 %v6466_v62 }
 0x2e7   :  { %2002 = vmatpush1.bf16.msra.mxu0 %v6467_v57 }
 0x2e8   :  { %2003 = vmatprep.subr.bf16.mxu0 %v6468_v63 }
 0x2eb   :  { %2004 = vmatpush1.bf16.msra.mxu0 %v6469_v60 }
 0x2ec   :  { %2005 = vmatprep.subr.bf16.mxu0 %v6470_v61 }
 0x2ef   :  { %2006 = vmatpush1.bf16.msra.mxu0 %v6471_v0 }
 0x385   :  { %v1543_v3 = vpop.f32.mrb[36].mxu0  ;;  %v1584_v4 = vpop.f32.mrb[24].mxu1 }
 0x386   :  { %v1545_v7 = vpop.f32.mrb[37].mxu0  ;;  %v1586_v8 = vpop.f32.mrb[25].mxu1 }
 0x387   :  { %v1632_v11 = vsel %vm748_vm8, %v1543_v3, %v1586_v8  ;;  %v1547_v12 = vpop.f32.mrb[38].mxu0  ;;  %v1588_v15 = vpop.f32.mrb[26].mxu1  ;;  %v5843_v3 = vld [vmem:[#allocation11 + $0x98] ss:$24 sps:$4 sm:$0xff]   ;;  %v5852_v8 = vld [vmem:[#allocation11 + $0xc8] ss:$24 sps:$4 sm:$0xff]  }
 0x388   :  { %v1635_v49 = vadd.f32 %v1632_v11, %v6475_v23  ;;  %v1548_v52 = vpop.f32.mrb[39].mxu0  ;;  %v1589_v53 = vpop.f32.mrb[27].mxu1  ;;  %6483 = vst [vmem:[#allocation35_spill] sm:$0xff] %v5852_v8  ;;  %v5854_v11 = vld [vmem:[#allocation11 + $0xcc] ss:$24 sps:$4 sm:$0xff]  }
 0x389   :  { %v5856_v12 = vld [vmem:[#allocation11 + $0xf4] ss:$24 sps:$4 sm:$0xff]   ;;  %v5879_v52 = vld [vmem:[#allocation11 + $0x128] ss:$24 sps:$4 sm:$0xff]  }
 0x38a   :  { %v4201_v40 = vmul.f32 -1.442695, %v1635_v49  ;;  %v5859_v15 = vld [vmem:[#allocation11 + $0xfc] ss:$24 sps:$4 sm:$0xff]   ;;  %v5872_v23 = vld [vmem:[#allocation11 + $0x12c] ss:$24 sps:$4 sm:$0xff]  }
 0x38b   :  { %6484 = vst [vmem:[#allocation36_spill] sm:$0xff] %v5859_v15  ;;  %6486 = vst [vmem:[#allocation25_spill] sm:$0xff] %v5872_v23  ;;  %v5875_v49 = vld [vmem:[#allocation11 + $0x120] ss:$24 sps:$4 sm:$0xff]   ;;  %v5881_v53 = vld [vmem:[#allocation11 + $0x154] ss:$24 sps:$4 sm:$0xff]  }
 0x38c   :  { %4811 = vpow2.f32 %v4201_v40  ;;  %6487 = vst [vmem:[#allocation26_spill] sm:$0xff] %v5879_v52  ;;  %v5884_v40 = vld [vmem:[#allocation11 + $0x15c] ss:$24 sps:$4 sm:$0xff]  }
 0x38d   :  { %6488 = vst [vmem:[#allocation27_spill] sm:$0xff] %v5884_v40 }
 0x396   :  { %v4812_v39 = vpop.eup %4811 }
 0x397   :  { %v1639_v51 = vadd.f32 1.0, %v4812_v39  ;;  %v5887_v39 = vld [vmem:[#allocation11 + $0x150] ss:$24 sps:$4 sm:$0xff]  }
 0x399   :  { %4813 = vrcp.f32 %v1639_v51  ;;  %v5891_v51 = vld [vmem:[#allocation11 + $0x158] ss:$24 sps:$4 sm:$0xff]  }
 0x39a   :  { %6489 = vst [vmem:[#allocation28_spill] sm:$0xff] %v5891_v51 }
 0x3a3   :  { %v4814_v14 = vpop.eup %4813 }
 0x3a5   :  { %v1625_v24 = vpop.f32.mrb[40].mxu0 }
 0x3a6   :  { %v1633_v30 = vsel %vm748_vm8, %v1545_v7, %v1625_v24  ;;  %v1627_v33 = vpop.f32.mrb[41].mxu0  ;;  %v5850_v7 = vld [vmem:[#allocation11 + $0xc4] ss:$24 sps:$4 sm:$0xff]   ;;  %v5893_v24 = vld [vmem:[#allocation11 + $0x14] ss:$24 sps:$4 sm:$0xff]  }
 0x3a7   :  { %v1642_v10 = vadd.f32 %v1633_v30, %v6478_v17  ;;  %v1634_v22 = vsel %vm748_vm8, %v1584_v4, %v1627_v33  ;;  %v1629_v42 = vpop.f32.mrb[42].mxu0  ;;  %v5848_v4 = vld [vmem:[#allocation11 + $0xc0] ss:$24 sps:$4 sm:$0xff]  }
 0x3a8   :  { %v1649_v34 = vadd.f32 %v1634_v22, %v5497_v5  ;;  %v1630_v28 = vpop.f32.mrb[43].mxu0 }
 0x3a9   :  { %v4202_v36 = vmul.f32 -1.442695, %v1642_v10  ;;  %v6492_v28 = vld [vmem:[#allocation47_spill] sm:$0xff] }
 0x3aa   :  { %v1650_v48 = vmul.f32 %v4814_v14, %v1649_v34  ;;  %v6491_v34 = vld [vmem:[#allocation43_spill] sm:$0xff] }
 0x3ab   :  { %4815 = vpow2.f32 %v4202_v36  ;;  %v6493_v14 = vsel %vm5392_vm3, %v6491_v34, %v6492_v28  ;;  %v6498_v28 = vld [vmem:[#allocation71_spill] sm:$0xff] }
 0x3ac   :  { %v1651_v55 = vadd.f32 %v1650_v48, %v6481_v1 }
 0x3b5   :  { %v4816_v56 = vpop.eup %4815 }
 0x3b6   :  { %v1646_v58 = vadd.f32 1.0, %v4816_v56 }
 0x3b8   :  { %4817 = vrcp.f32 %v1646_v58 }
 0x3b9   :  { %4819 = vtanh.f32 %v1651_v55 }
 0x3c2   :  { %v4818_v59 = vpop.eup %4817 }
 0x3c3   :  { %v1653_v62 = vsub.f32 1.0, %v4818_v59  ;;  %v4820_v57 = vpop.eup %4819  ;;  %v1655_v60 = vmul.f32 %v4818_v59, %v5701_v46 }
 0x3c5   :  { %v1654_v63 = vmul.f32 %v4820_v57, %v1653_v62  ;;  %v6494_v62 = vld [vmem:[#allocation46_spill] sm:$0xff] }
 0x3c6   :  { %v6495_v57 = vld [vmem:[#allocation70_spill] sm:$0xff] }
 0x3c7   :  { %v5778_v61 = vadd.f32 %v1655_v60, %v1654_v63  ;;  %v6496_v63 = vsel %vm5392_vm3, %v6494_v62, %v6495_v57  ;;  %v5929_v62 = vld [vmem:[#allocation11 + $0x44] ss:$24 sps:$4 sm:$0xff]   ;;  %v5932_v57 = vld [vmem:[#allocation11 + $0x40] ss:$24 sps:$4 sm:$0xff]  }
 0x3c9   :  { %6482 = vst [vmem:[#allocation23_spill] sm:$0xff] %v5778_v61  ;;  %v1661_v0 = vpack.c.bf16 %v5778_v61, %v5778_v61 }
 0x3cb   :  { %1983 = vmatmul.mubr.bf16.vlgmr.msra.gmra.mrb[28].mxu1 %v1661_v0  ;;  %2024 = vmatmul.mubr.bf16.vlgmr.msra.gmra.mrb[44].mxu0 %v1661_v0 }
 0x3cc   :  { %2033 = vmatpush1.bf16.msra.mxu1 %v5594_v6  ;;  %2064 = vmatprep.mubr.bf16.mxu1 %v6442_v25  ;;  %v5800_v6 = vld [vmem:[#allocation11 + $0x4] ss:$24 sps:$4 sm:$0xff]  }
 0x3cd   :  { %2034 = vmatprep.subr.bf16.mxu1 %v5598_v44  ;;  %2423 = vmatprep.mubr.bf16.mxu0 %v6442_v25  ;;  %v5826_v44 = vld [vmem:[#allocation11 + $0x60] ss:$24 sps:$4 sm:$0xff]  }
 0x3ce   :  { %2391 = vmatprep.subr.bf16.mxu0 %v5800_v6 }
 0x3d0   :  { %2035 = vmatpush1.bf16.msra.mxu1 %v5601_v29  ;;  %v5802_v29 = vld [vmem:[#allocation11] ss:$24 sps:$4 sm:$0xff]  }
 0x3d1   :  { %2036 = vmatprep.subr.bf16.mxu1 %v5605_v35  ;;  %2392 = vmatpush1.bf16.msra.mxu0 %v5802_v29  ;;  %v5828_v35 = vld [vmem:[#allocation11 + $0x6c] ss:$24 sps:$4 sm:$0xff]  }
 0x3d4   :  { %2037 = vmatpush1.bf16.msra.mxu1 %v5611_v43  ;;  %v5831_v43 = vld [vmem:[#allocation11 + $0x68] ss:$24 sps:$4 sm:$0xff]  }
 0x3d5   :  { %2038 = vmatprep.subr.bf16.mxu1 %v5614_v37  ;;  %v5836_v37 = vld [vmem:[#allocation11 + $0x94] ss:$24 sps:$4 sm:$0xff]  }
 0x3d8   :  { %2039 = vmatpush1.bf16.msra.mxu1 %v5619_v41  ;;  %v5838_v41 = vld [vmem:[#allocation11 + $0x90] ss:$24 sps:$4 sm:$0xff]  }
 0x3d9   :  { %2040 = vmatprep.subr.bf16.mxu1 %v5622_v50  ;;  %v5840_v50 = vld [vmem:[#allocation11 + $0x9c] ss:$24 sps:$4 sm:$0xff]  }
 0x3dc   :  { %2041 = vmatpush1.bf16.msra.mxu1 %v5627_v27  ;;  %v5804_v27 = vld [vmem:[#allocation11 + $0xc] ss:$24 sps:$4 sm:$0xff]  }
 0x3dd   :  { %2042 = vmatprep.subr.bf16.mxu1 %v5630_v18  ;;  %v5824_v18 = vld [vmem:[#allocation11 + $0x64] ss:$24 sps:$4 sm:$0xff]  }
 0x3e0   :  { %2043 = vmatpush1.bf16.msra.mxu1 %v5635_v54  ;;  %v5807_v54 = vld [vmem:[#allocation11 + $0x8] ss:$24 sps:$4 sm:$0xff]  }
 0x3e1   :  { %2044 = vmatprep.subr.bf16.mxu1 %v5638_v9  ;;  %v5816_v9 = vld [vmem:[#allocation11 + $0x3c] ss:$24 sps:$4 sm:$0xff]  }
 0x3e4   :  { %2045 = vmatpush1.bf16.msra.mxu1 %v5643_v32  ;;  %v5812_v32 = vld [vmem:[#allocation11 + $0x34] ss:$24 sps:$4 sm:$0xff]  }
 0x3e5   :  { %2046 = vmatprep.subr.bf16.mxu1 %v5646_v2  ;;  %2393 = vmatprep.subr.bf16.mxu0 %v5812_v32  ;;  %v5819_v2 = vld [vmem:[#allocation11 + $0x38] ss:$24 sps:$4 sm:$0xff]  }
 0x3e8   :  { %2047 = vmatpush1.bf16.msra.mxu1 %v5651_v47  ;;  %v5814_v47 = vld [vmem:[#allocation11 + $0x30] ss:$24 sps:$4 sm:$0xff]  }
 0x3e9   :  { %2432 = vmatprep.subr.bf16.mxu1 %v5804_v27  ;;  %2394 = vmatpush1.bf16.msra.mxu0 %v5814_v47 }
 0x3ea   :  { %2395 = vmatprep.subr.bf16.mxu0 %v5824_v18 }
 0x3eb   :  { %2065 = vmatmul.mubr.bf16.vlgmr.msra.gmra.mrb[32].mxu1 %v1661_v0 }
 0x3ec   :  { %2464 = vmatprep.mubr.bf16.mxu1 %v6442_v25  ;;  %2433 = vmatpush1.bf16.msra.mxu1 %v5807_v54 }
 0x3ed   :  { %2434 = vmatprep.subr.bf16.mxu1 %v5816_v9  ;;  %2396 = vmatpush1.bf16.msra.mxu0 %v5826_v44 }
 0x3ee   :  { %2397 = vmatprep.subr.bf16.mxu0 %v5836_v37 }
 0x3f0   :  { %2435 = vmatpush1.bf16.msra.mxu1 %v5819_v2 }
 0x3f1   :  { %2436 = vmatprep.subr.bf16.mxu1 %v5828_v35  ;;  %2398 = vmatpush1.bf16.msra.mxu0 %v5838_v41 }
 0x3f2   :  { %2399 = vmatprep.subr.bf16.mxu0 %v5850_v7 }
 0x3f4   :  { %2437 = vmatpush1.bf16.msra.mxu1 %v5831_v43 }
 0x3f5   :  { %2438 = vmatprep.subr.bf16.mxu1 %v5840_v50  ;;  %2400 = vmatpush1.bf16.msra.mxu0 %v5848_v4 }
 0x3f6   :  { %2401 = vmatprep.subr.bf16.mxu0 %v5856_v12 }
 0x3f8   :  { %2439 = vmatpush1.bf16.msra.mxu1 %v5843_v3 }
 0x3f9   :  { %2440 = vmatprep.subr.bf16.mxu1 %v5854_v11  ;;  %2402 = vmatpush1.bf16.msra.mxu0 %v5863_v16 }
 0x3fa   :  { %2403 = vmatprep.subr.bf16.mxu0 %v5869_v20 }
 0x3fc   :  { %2441 = vmatpush1.bf16.msra.mxu1 %v5852_v8 }
 0x3fd   :  { %2442 = vmatprep.subr.bf16.mxu1 %v5859_v15  ;;  %2404 = vmatpush1.bf16.msra.mxu0 %v5875_v49 }
 0x3fe   :  { %2405 = vmatprep.subr.bf16.mxu0 %v5881_v53 }
 0x400   :  { %2443 = vmatpush1.bf16.msra.mxu1 %v5867_v19 }
 0x401   :  { %2444 = vmatprep.subr.bf16.mxu1 %v5872_v23  ;;  %2406 = vmatpush1.bf16.msra.mxu0 %v5887_v39 }
 0x402   :  { %2473 = vmatprep.subr.bf16.mxu0 %v5893_v24 }
 0x404   :  { %2445 = vmatpush1.bf16.msra.mxu1 %v5879_v52 }
 0x405   :  { %2446 = vmatprep.subr.bf16.mxu1 %v5884_v40 }
 0x408   :  { %2447 = vmatpush1.bf16.msra.mxu1 %v5891_v51 }
 0x409   :  { %2832 = vmatprep.subr.bf16.mxu1 %v5800_v6 }
 0x49e   :  { %v1984_v30 = vpop.f32.mrb[28].mxu1  ;;  %v2025_v33 = vpop.f32.mrb[44].mxu0 }
 0x49f   :  { %v1986_v45 = vpop.f32.mrb[29].mxu1  ;;  %v2027_v38 = vpop.f32.mrb[45].mxu0 }
 0x4a0   :  { %v2073_v17 = vsel %vm748_vm8, %v1984_v30, %v2027_v38  ;;  %v1988_v10 = vpop.f32.mrb[30].mxu1  ;;  %v2029_v22 = vpop.f32.mrb[46].mxu0 }
 0x4a1   :  { %v2076_v36 = vadd.f32 %v2073_v17, %v6493_v14  ;;  %v1989_v48 = vpop.f32.mrb[31].mxu1  ;;  %v2030_v21 = vpop.f32.mrb[47].mxu0 }
 0x4a3   :  { %v4251_v13 = vmul.f32 -1.442695, %v2076_v36 }
 0x4a5   :  { %4821 = vpow2.f32 %v4251_v13 }
 0x4af   :  { %v4822_v1 = vpop.eup %4821 }
 0x4b0   :  { %v2080_v55 = vadd.f32 1.0, %v4822_v1 }
 0x4b2   :  { %4823 = vrcp.f32 %v2080_v55 }
 0x4bc   :  { %v4824_v10 = vpop.eup %4823 }
 0x4be   :  { %v2066_v56 = vpop.f32.mrb[32].mxu1 }
 0x4bf   :  { %v2074_v58 = vsel %vm748_vm8, %v1986_v45, %v2066_v56  ;;  %v2068_v59 = vpop.f32.mrb[33].mxu1  ;;  %v6497_v45 = vld [vmem:[#allocation44_spill] sm:$0xff] }
 0x4c0   :  { %v2083_v60 = vadd.f32 %v2074_v58, %v6496_v63  ;;  %v2075_v0 = vsel %vm748_vm8, %v2025_v33, %v2068_v59  ;;  %v2070_v30 = vpop.f32.mrb[34].mxu1  ;;  %v6499_v14 = vsel %vm5392_vm3, %v6497_v45, %v6498_v28  ;;  %v5925_v59 = vld [vmem:[#allocation11 + $0x10] ss:$24 sps:$4 sm:$0xff]   ;;  %v5936_v63 = vld [vmem:[#allocation11 + $0x74] ss:$24 sps:$4 sm:$0xff]  }
 0x4c1   :  { %v2090_v38 = vadd.f32 %v2075_v0, %v5497_v5  ;;  %v2071_v17 = vpop.f32.mrb[35].mxu1  ;;  %v5945_v0 = vld [vmem:[#allocation11 + $0xa4] ss:$24 sps:$4 sm:$0xff]   ;;  %v5950_v30 = vld [vmem:[#allocation11 + $0xa0] ss:$24 sps:$4 sm:$0xff]  }
 0x4c2   :  { %v4252_v22 = vmul.f32 -1.442695, %v2083_v60  ;;  %v5942_v60 = vld [vmem:[#allocation11 + $0x70] ss:$24 sps:$4 sm:$0xff]   ;;  %v5977_v28 = vld [vmem:[#allocation11 + $0x164] ss:$24 sps:$4 sm:$0xff]  }
 0x4c3   :  { %v2091_v34 = vmul.f32 %v4824_v10, %v2090_v38  ;;  %v5953_v38 = vld [vmem:[#allocation11 + $0xd4] ss:$24 sps:$4 sm:$0xff]   ;;  %v5958_v17 = vld [vmem:[#allocation11 + $0xd0] ss:$24 sps:$4 sm:$0xff]   ;;  %v5961_v10 = vld [vmem:[#allocation11 + $0x104] ss:$24 sps:$4 sm:$0xff]  }
 0x4c4   :  { %4825 = vpow2.f32 %v4252_v22  ;;  %v5966_v22 = vld [vmem:[#allocation11 + $0x100] ss:$24 sps:$4 sm:$0xff]   ;;  %v5974_v45 = vld [vmem:[#allocation11 + $0x130] ss:$24 sps:$4 sm:$0xff]  }
 0x4c5   :  { %v2092_v36 = vadd.f32 %v2091_v34, %v6499_v14  ;;  %v5969_v34 = vld [vmem:[#allocation11 + $0x134] ss:$24 sps:$4 sm:$0xff]   ;;  %v5982_v14 = vld [vmem:[#allocation11 + $0x160] ss:$24 sps:$4 sm:$0xff]  }
 0x4ce   :  { %v4826_v48 = vpop.eup %4825 }
 0x4cf   :  { %v2087_v21 = vadd.f32 1.0, %v4826_v48 }
 0x4d1   :  { %4827 = vrcp.f32 %v2087_v21 }
 0x4d2   :  { %4829 = vtanh.f32 %v2092_v36 }
 0x4db   :  { %v4828_v13 = vpop.eup %4827 }
 0x4dc   :  { %v2094_v33 = vsub.f32 1.0, %v4828_v13  ;;  %v4830_v1 = vpop.eup %4829  ;;  %v2096_v56 = vmul.f32 %v4828_v13, %v5778_v61  ;;  %v6502_v61 = vld [vmem:[#allocation52_spill] sm:$0xff] }
 0x4de   :  { %v2095_v55 = vmul.f32 %v4830_v1, %v2094_v33 }
 0x4e0   :  { %v5923_v58 = vadd.f32 %v2096_v56, %v2095_v55 }
 0x4e2   :  { %v2102_v42 = vpack.c.bf16 %v5923_v58, %v5923_v58 }
 0x4e4   :  { %2424 = vmatmul.mubr.bf16.vlgmr.msra.gmra.mrb[48].mxu0 %v2102_v42  ;;  %2465 = vmatmul.mubr.bf16.vlgmr.msra.gmra.mrb[36].mxu1 %v2102_v42 }
 0x4e5   :  { %2474 = vmatpush1.bf16.msra.mxu0 %v5925_v59  ;;  %2505 = vmatprep.mubr.bf16.mxu0 %v6442_v25 }
 0x4e6   :  { %2475 = vmatprep.subr.bf16.mxu0 %v5929_v62  ;;  %2833 = vmatpush1.bf16.msra.mxu1 %v5802_v29 }
 0x4e7   :  { %2834 = vmatprep.subr.bf16.mxu1 %v5812_v32  ;;  %2864 = vmatprep.mubr.bf16.mxu1 %v6442_v25 }
 0x4e9   :  { %2476 = vmatpush1.bf16.msra.mxu0 %v5932_v57 }
 0x4ea   :  { %2477 = vmatprep.subr.bf16.mxu0 %v5936_v63  ;;  %2835 = vmatpush1.bf16.msra.mxu1 %v5814_v47 }
 0x4eb   :  { %2836 = vmatprep.subr.bf16.mxu1 %v5824_v18 }
 0x4ed   :  { %2478 = vmatpush1.bf16.msra.mxu0 %v5942_v60 }
 0x4ee   :  { %2479 = vmatprep.subr.bf16.mxu0 %v5945_v0  ;;  %2837 = vmatpush1.bf16.msra.mxu1 %v5826_v44 }
 0x4ef   :  { %2838 = vmatprep.subr.bf16.mxu1 %v5836_v37 }
 0x4f1   :  { %2480 = vmatpush1.bf16.msra.mxu0 %v5950_v30 }
 0x4f2   :  { %2481 = vmatprep.subr.bf16.mxu0 %v5953_v38  ;;  %2839 = vmatpush1.bf16.msra.mxu1 %v5838_v41 }
 0x4f3   :  { %2840 = vmatprep.subr.bf16.mxu1 %v5850_v7 }
 0x4f5   :  { %2482 = vmatpush1.bf16.msra.mxu0 %v5958_v17 }
 0x4f6   :  { %2483 = vmatprep.subr.bf16.mxu0 %v5961_v10  ;;  %2841 = vmatpush1.bf16.msra.mxu1 %v5848_v4 }
 0x4f7   :  { %2842 = vmatprep.subr.bf16.mxu1 %v5856_v12 }
 0x4f9   :  { %2484 = vmatpush1.bf16.msra.mxu0 %v5966_v22 }
 0x4fa   :  { %2485 = vmatprep.subr.bf16.mxu0 %v5969_v34  ;;  %2843 = vmatpush1.bf16.msra.mxu1 %v5863_v16 }
 0x4fb   :  { %2844 = vmatprep.subr.bf16.mxu1 %v5869_v20 }
 0x4fd   :  { %2486 = vmatpush1.bf16.msra.mxu0 %v5974_v45 }
 0x4fe   :  { %2487 = vmatprep.subr.bf16.mxu0 %v5977_v28  ;;  %2845 = vmatpush1.bf16.msra.mxu1 %v5875_v49 }
 0x4ff   :  { %2846 = vmatprep.subr.bf16.mxu1 %v5881_v53 }
 0x501   :  { %2488 = vmatpush1.bf16.msra.mxu0 %v5982_v14 }
 0x502   :  { %2873 = vmatprep.subr.bf16.mxu0 %v5804_v27  ;;  %2847 = vmatpush1.bf16.msra.mxu1 %v5887_v39 }
 0x503   :  { %2914 = vmatprep.subr.bf16.mxu1 %v5893_v24 }
 0x504   :  { %2506 = vmatmul.mubr.bf16.vlgmr.msra.gmra.mrb[52].mxu0 %v2102_v42  ;;  %v6501_v42 = vld [vmem:[#allocation48_spill] sm:$0xff] }
 0x505   :  { %2874 = vmatpush1.bf16.msra.mxu0 %v5807_v54  ;;  %2905 = vmatprep.mubr.bf16.mxu0 %v6442_v25  ;;  %v6503_v46 = vsel %vm5417_vm4, %v6501_v42, %v6502_v61 }
 0x506   :  { %2875 = vmatprep.subr.bf16.mxu0 %v5816_v9 }
 0x509   :  { %2876 = vmatpush1.bf16.msra.mxu0 %v5819_v2 }
 0x50a   :  { %2877 = vmatprep.subr.bf16.mxu0 %v5828_v35 }
 0x50d   :  { %2878 = vmatpush1.bf16.msra.mxu0 %v5831_v43 }
 0x50e   :  { %2879 = vmatprep.subr.bf16.mxu0 %v5840_v50 }
 0x511   :  { %2880 = vmatpush1.bf16.msra.mxu0 %v5843_v3 }
 0x512   :  { %2881 = vmatprep.subr.bf16.mxu0 %v5854_v11 }
 0x515   :  { %2882 = vmatpush1.bf16.msra.mxu0 %v5852_v8 }
 0x516   :  { %2883 = vmatprep.subr.bf16.mxu0 %v5859_v15 }
 0x519   :  { %2884 = vmatpush1.bf16.msra.mxu0 %v5867_v19 }
 0x51a   :  { %2885 = vmatprep.subr.bf16.mxu0 %v5872_v23 }
 0x51d   :  { %2886 = vmatpush1.bf16.msra.mxu0 %v5879_v52 }
 0x51e   :  { %2887 = vmatprep.subr.bf16.mxu0 %v5884_v40 }
 0x521   :  { %2888 = vmatpush1.bf16.msra.mxu0 %v5891_v51 }
 0x522   :  { %3273 = vmatprep.subr.bf16.mxu0 %v5800_v6 }
 0x5b7   :  { %v2425_v36 = vpop.f32.mrb[48].mxu0  ;;  %v2466_v48 = vpop.f32.mrb[36].mxu1 }
 0x5b8   :  { %v2427_v21 = vpop.f32.mrb[49].mxu0  ;;  %v2468_v13 = vpop.f32.mrb[37].mxu1 }
 0x5b9   :  { %v2514_v33 = vsel %vm748_vm8, %v2425_v36, %v2468_v13  ;;  %v2429_v1 = vpop.f32.mrb[50].mxu0  ;;  %v2470_v55 = vpop.f32.mrb[38].mxu1  ;;  %v6504_v13 = vld [vmem:[#allocation51_spill] sm:$0xff] }
 0x5ba   :  { %v2517_v26 = vadd.f32 %v2514_v33, %v6503_v46  ;;  %v2430_v40 = vpop.f32.mrb[51].mxu0  ;;  %v2471_v52 = vpop.f32.mrb[39].mxu1  ;;  %v6505_v1 = vld [vmem:[#allocation72_spill] sm:$0xff] }
 0x5bb   :  { %v6506_v55 = vsel %vm5417_vm4, %v6504_v13, %v6505_v1 }
 0x5bc   :  { %v4301_v51 = vmul.f32 -1.442695, %v2517_v26 }
 0x5be   :  { %4831 = vpow2.f32 %v4301_v51 }
 0x5c8   :  { %v4832_v6 = vpop.eup %4831 }
 0x5c9   :  { %v2521_v23 = vadd.f32 1.0, %v4832_v6 }
 0x5cb   :  { %4833 = vrcp.f32 %v2521_v23 }
 0x5d5   :  { %v4834_v40 = vpop.eup %4833 }
 0x5d7   :  { %v2507_v19 = vpop.f32.mrb[52].mxu0 }
 0x5d8   :  { %v2515_v15 = vsel %vm748_vm8, %v2427_v21, %v2507_v19  ;;  %v2509_v36 = vpop.f32.mrb[53].mxu0  ;;  %v6507_v19 = vld [vmem:[#allocation49_spill] sm:$0xff] }
 0x5d9   :  { %v2524_v8 = vadd.f32 %v2515_v15, %v6506_v55  ;;  %v2516_v46 = vsel %vm748_vm8, %v2466_v48, %v2509_v36  ;;  %v2511_v61 = vpop.f32.mrb[54].mxu0  ;;  %v6508_v21 = vld [vmem:[#allocation73_spill] sm:$0xff] }
 0x5da   :  { %v2531_v26 = vadd.f32 %v2516_v46, %v5497_v5  ;;  %v2512_v52 = vpop.f32.mrb[55].mxu0  ;;  %v6509_v33 = vsel %vm5417_vm4, %v6507_v19, %v6508_v21  ;;  %v6522_v19 = vld [vmem:[#allocation74_spill] sm:$0xff] }
 0x5db   :  { %v4302_v23 = vmul.f32 -1.442695, %v2524_v8 }
 0x5dc   :  { %v2532_v51 = vmul.f32 %v4834_v40, %v2531_v26 }
 0x5dd   :  { %4835 = vpow2.f32 %v4302_v23 }
 0x5de   :  { %v2533_v42 = vadd.f32 %v2532_v51, %v6509_v33  ;;  %v6521_v51 = vld [vmem:[#allocation56_spill] sm:$0xff] }
 0x5df   :  { %v6523_v21 = vsel %vm5434_vm5, %v6521_v51, %v6522_v19 }
 0x5e7   :  { %v4836_v6 = vpop.eup %4835 }
 0x5e8   :  { %v2528_v13 = vadd.f32 1.0, %v4836_v6 }
 0x5ea   :  { %4837 = vrcp.f32 %v2528_v13  ;;  %v6101_v13 = vld [vmem:[#allocation13] sm:$0xff] }
 0x5eb   :  { %4839 = vtanh.f32 %v2533_v42 }
 0x5f4   :  { %v4838_v15 = vpop.eup %4837 }
 0x5f5   :  { %v2535_v48 = vsub.f32 1.0, %v4838_v15  ;;  %v4840_v36 = vpop.eup %4839  ;;  %v2537_v5 = vmul.f32 %v4838_v15, %v5923_v58 }
 0x5f7   :  { %v2536_v1 = vmul.f32 %v4840_v36, %v2535_v48 }
 0x5f9   :  { %v6031_v55 = vadd.f32 %v2537_v5, %v2536_v1 }
 0x5fb   :  { %v2543_v8 = vpack.c.bf16 %v6031_v55, %v6031_v55 }
 0x5fd   :  { %2865 = vmatmul.mubr.bf16.vlgmr.msra.gmra.mrb[40].mxu1 %v2543_v8  ;;  %2906 = vmatmul.mubr.bf16.vlgmr.msra.gmra.mrb[56].mxu0 %v2543_v8 }
 0x5fe   :  { %2915 = vmatpush1.bf16.msra.mxu1 %v5925_v59  ;;  %2946 = vmatprep.mubr.bf16.mxu1 %v6442_v25 }
 0x5ff   :  { %2916 = vmatprep.subr.bf16.mxu1 %v5929_v62  ;;  %3274 = vmatpush1.bf16.msra.mxu0 %v5802_v29  ;;  %v6510_v29 = vld [vmem:[#allocation35_spill] sm:$0xff] }
 0x600   :  { %3275 = vmatprep.subr.bf16.mxu0 %v5812_v32  ;;  %3305 = vmatprep.mubr.bf16.mxu0 %v6442_v25  ;;  %v6513_v32 = vld [vmem:[#allocation25_spill] sm:$0xff] }
 0x602   :  { %2917 = vmatpush1.bf16.msra.mxu1 %v5932_v57 }
 0x603   :  { %2918 = vmatprep.subr.bf16.mxu1 %v5936_v63  ;;  %3276 = vmatpush1.bf16.msra.mxu0 %v5814_v47  ;;  %v6514_v47 = vld [vmem:[#allocation26_spill] sm:$0xff] }
 0x604   :  { %3277 = vmatprep.subr.bf16.mxu0 %v5824_v18 }
 0x606   :  { %2919 = vmatpush1.bf16.msra.mxu1 %v5942_v60 }
 0x607   :  { %2920 = vmatprep.subr.bf16.mxu1 %v5945_v0  ;;  %3278 = vmatpush1.bf16.msra.mxu0 %v5826_v44 }
 0x608   :  { %3279 = vmatprep.subr.bf16.mxu0 %v5836_v37 }
 0x60a   :  { %2921 = vmatpush1.bf16.msra.mxu1 %v5950_v30 }
 0x60b   :  { %2922 = vmatprep.subr.bf16.mxu1 %v5953_v38  ;;  %3280 = vmatpush1.bf16.msra.mxu0 %v5838_v41 }
 0x60c   :  { %3281 = vmatprep.subr.bf16.mxu0 %v5850_v7 }
 0x60e   :  { %2923 = vmatpush1.bf16.msra.mxu1 %v5958_v17 }
 0x60f   :  { %2924 = vmatprep.subr.bf16.mxu1 %v5961_v10  ;;  %3282 = vmatpush1.bf16.msra.mxu0 %v5848_v4 }
 0x610   :  { %3283 = vmatprep.subr.bf16.mxu0 %v5856_v12 }
 0x612   :  { %2925 = vmatpush1.bf16.msra.mxu1 %v5966_v22 }
 0x613   :  { %2926 = vmatprep.subr.bf16.mxu1 %v5969_v34  ;;  %3284 = vmatpush1.bf16.msra.mxu0 %v5863_v16 }
 0x614   :  { %3285 = vmatprep.subr.bf16.mxu0 %v5869_v20  ;;  %v6518_v20 = vld [vmem:[#allocation53_spill] sm:$0xff] }
 0x616   :  { %2927 = vmatpush1.bf16.msra.mxu1 %v5974_v45 }
 0x617   :  { %2928 = vmatprep.subr.bf16.mxu1 %v5977_v28  ;;  %3286 = vmatpush1.bf16.msra.mxu0 %v5875_v49  ;;  %v6519_v49 = vld [vmem:[#allocation57_spill] sm:$0xff] }
 0x618   :  { %3287 = vmatprep.subr.bf16.mxu0 %v5881_v53  ;;  %v6520_v53 = vsel %vm5434_vm5, %v6518_v20, %v6519_v49 }
 0x61a   :  { %2929 = vmatpush1.bf16.msra.mxu1 %v5982_v14 }
 0x61b   :  { %3314 = vmatprep.subr.bf16.mxu1 %v5804_v27  ;;  %3288 = vmatpush1.bf16.msra.mxu0 %v5887_v39  ;;  %v6511_v27 = vld [vmem:[#allocation36_spill] sm:$0xff] }
 0x61c   :  { %3355 = vmatprep.subr.bf16.mxu0 %v5893_v24 }
 0x61d   :  { %2947 = vmatmul.mubr.bf16.vlgmr.msra.gmra.mrb[44].mxu1 %v2543_v8  ;;  %v6524_v8 = vld [vmem:[#allocation54_spill] sm:$0xff] }
 0x61e   :  { %3315 = vmatpush1.bf16.msra.mxu1 %v5807_v54  ;;  %3346 = vmatprep.mubr.bf16.mxu1 %v6442_v25  ;;  %v6512_v54 = vld [vmem:[#allocation37_spill] sm:$0xff] }
 0x61f   :  { %3316 = vmatprep.subr.bf16.mxu1 %v5816_v9  ;;  %v6515_v9 = vld [vmem:[#allocation27_spill] sm:$0xff] }
 0x622   :  { %3317 = vmatpush1.bf16.msra.mxu1 %v5819_v2  ;;  %v6516_v2 = vld [vmem:[#allocation28_spill] sm:$0xff] }
 0x623   :  { %3318 = vmatprep.subr.bf16.mxu1 %v5828_v35 }
 0x626   :  { %3319 = vmatpush1.bf16.msra.mxu1 %v5831_v43 }
 0x627   :  { %3320 = vmatprep.subr.bf16.mxu1 %v5840_v50 }
 0x62a   :  { %3321 = vmatpush1.bf16.msra.mxu1 %v5843_v3 }
 0x62b   :  { %3322 = vmatprep.subr.bf16.mxu1 %v5854_v11 }
 0x62e   :  { %3323 = vmatpush1.bf16.msra.mxu1 %v6510_v29 }
 0x62f   :  { %3324 = vmatprep.subr.bf16.mxu1 %v6511_v27 }
 0x632   :  { %3325 = vmatpush1.bf16.msra.mxu1 %v6512_v54 }
 0x633   :  { %3326 = vmatprep.subr.bf16.mxu1 %v6513_v32 }
 0x636   :  { %3327 = vmatpush1.bf16.msra.mxu1 %v6514_v47 }
 0x637   :  { %3328 = vmatprep.subr.bf16.mxu1 %v6515_v9 }
 0x63a   :  { %3329 = vmatpush1.bf16.msra.mxu1 %v6516_v2 }
 0x6d0   :  { %v2866_v18 = vpop.f32.mrb[40].mxu1  ;;  %v2907_v44 = vpop.f32.mrb[56].mxu0 }
 0x6d1   :  { %v2868_v37 = vpop.f32.mrb[41].mxu1  ;;  %v2909_v41 = vpop.f32.mrb[57].mxu0 }
 0x6d2   :  { %v2955_v4 = vsel %vm748_vm8, %v2866_v18, %v2909_v41  ;;  %v2870_v7 = vpop.f32.mrb[42].mxu1  ;;  %v2911_v12 = vpop.f32.mrb[58].mxu0  ;;  %v6525_v18 = vld [vmem:[#allocation75_spill] sm:$0xff] }
 0x6d3   :  { %v2958_v39 = vadd.f32 %v2955_v4, %v6520_v53  ;;  %v2871_v24 = vpop.f32.mrb[43].mxu1  ;;  %v2912_v56 = vpop.f32.mrb[59].mxu0 }
 0x6d5   :  { %v4351_v46 = vmul.f32 -1.442695, %v2958_v39 }
 0x6d7   :  { %4841 = vpow2.f32 %v4351_v46 }
 0x6e1   :  { %v4842_v61 = vpop.eup %4841 }
 0x6e2   :  { %v2962_v26 = vadd.f32 1.0, %v4842_v61 }
 0x6e4   :  { %4843 = vrcp.f32 %v2962_v26 }
 0x6ee   :  { %v4844_v36 = vpop.eup %4843 }
 0x6f0   :  { %v2948_v52 = vpop.f32.mrb[44].mxu1 }
 0x6f1   :  { %v2956_v40 = vsel %vm748_vm8, %v2868_v37, %v2948_v52  ;;  %v2950_v23 = vpop.f32.mrb[45].mxu1  ;;  %v6526_v37 = vsel %vm5434_vm5, %v6524_v8, %v6525_v18  ;;  %v6530_v52 = vld [vmem:[#allocation58_spill] sm:$0xff] }
 0x6f2   :  { %v2965_v33 = vadd.f32 %v2956_v40, %v6523_v21  ;;  %v2957_v42 = vsel %vm748_vm8, %v2907_v44, %v2950_v23  ;;  %v2952_v6 = vpop.f32.mrb[46].mxu1  ;;  %v6531_v40 = vld [vmem:[#allocation62_spill] sm:$0xff] }
 0x6f3   :  { %v2972_v15 = vadd.f32 %v6101_v13, %v2957_v42  ;;  %v2953_v48 = vpop.f32.mrb[47].mxu1  ;;  %v6532_v23 = vsel %vm5460_vm6, %v6530_v52, %v6531_v40  ;;  %v6541_v40 = vld [vmem:[#allocation63_spill] sm:$0xff] }
 0x6f4   :  { %v4352_v1 = vmul.f32 -1.442695, %v2965_v33 }
 0x6f5   :  { %v2973_v5 = vmul.f32 %v4844_v36, %v2972_v15 }
 0x6f6   :  { %4845 = vpow2.f32 %v4352_v1  ;;  %v6533_v1 = vld [vmem:[#allocation61_spill] sm:$0xff] }
 0x6f7   :  { %v2974_v41 = vadd.f32 %v2973_v5, %v6526_v37  ;;  %v6534_v5 = vld [vmem:[#allocation76_spill] sm:$0xff] }
 0x6f8   :  { %v6535_v8 = vsel %vm5460_vm6, %v6533_v1, %v6534_v5  ;;  %v6544_v5 = vld [vmem:[#allocation66_spill] sm:$0xff] }
 0x700   :  { %v4846_v4 = vpop.eup %4845 }
 0x701   :  { %v2969_v7 = vadd.f32 1.0, %v4846_v4 }
 0x703   :  { %4847 = vrcp.f32 %v2969_v7 }
 0x704   :  { %4849 = vtanh.f32 %v2974_v41 }
 0x70d   :  { %v4848_v44 = vpop.eup %4847 }
 0x70e   :  { %v2976_v12 = vsub.f32 1.0, %v4848_v44  ;;  %v4850_v20 = vpop.eup %4849  ;;  %v2978_v53 = vmul.f32 %v4848_v44, %v6031_v55 }
 0x710   :  { %v2977_v49 = vmul.f32 %v4850_v20, %v2976_v12 }
 0x712   :  { %v6110_v39 = vadd.f32 %v2978_v53, %v2977_v49  ;;  %v6536_v49 = vld [vmem:[#allocation59_spill] sm:$0xff]  ;;  %v6537_v53 = vld [vmem:[#allocation77_spill] sm:$0xff] }
 0x714   :  { %v2984_v24 = vpack.c.bf16 %v6110_v39, %v6110_v39 }
 0x716   :  { %3306 = vmatmul.mubr.bf16.vlgmr.msra.gmra.mrb[60].mxu0 %v2984_v24  ;;  %3347 = vmatmul.mubr.bf16.vlgmr.msra.gmra.mrb[48].mxu1 %v2984_v24 }
 0x717   :  { %3356 = vmatpush1.bf16.msra.mxu0 %v5925_v59  ;;  %3387 = vmatprep.mubr.bf16.mxu0 %v6442_v25  ;;  %v4739_v59 = vld [vmem:[#allocation11 + $0xc] ss:$24 sps:$4 sm:$0xff]  }
 0x718   :  { %3357 = vmatprep.subr.bf16.mxu0 %v5929_v62  ;;  %3746 = vmatprep.mubr.bf16.mxu1 %v6442_v25  ;;  %v4737_v62 = vld [vmem:[#allocation11 + $0x8] ss:$24 sps:$4 sm:$0xff]  }
 0x71b   :  { %3358 = vmatpush1.bf16.msra.mxu0 %v5932_v57  ;;  %v4742_v57 = vld [vmem:[#allocation11 + $0x3c] ss:$24 sps:$4 sm:$0xff]  }
 0x71c   :  { %3359 = vmatprep.subr.bf16.mxu0 %v5936_v63  ;;  %v4740_v63 = vld [vmem:[#allocation11 + $0x38] ss:$24 sps:$4 sm:$0xff]  }
 0x71f   :  { %3360 = vmatpush1.bf16.msra.mxu0 %v5942_v60 }
 0x720   :  { %3361 = vmatprep.subr.bf16.mxu0 %v5945_v0  ;;  %v4746_v0 = vld [vmem:[#allocation11 + $0x30] ss:$24 sps:$4 sm:$0xff]  }
 0x723   :  { %3362 = vmatpush1.bf16.msra.mxu0 %v5950_v30  ;;  %v4751_v30 = vld [vmem:[#allocation11 + $0x64] ss:$24 sps:$4 sm:$0xff]  }
 0x724   :  { %3363 = vmatprep.subr.bf16.mxu0 %v5953_v38  ;;  %v4749_v38 = vld [vmem:[#allocation11 + $0x60] ss:$24 sps:$4 sm:$0xff]  }
 0x727   :  { %3364 = vmatpush1.bf16.msra.mxu0 %v5958_v17  ;;  %v4754_v17 = vld [vmem:[#allocation11 + $0x94] ss:$24 sps:$4 sm:$0xff]  }
 0x728   :  { %3365 = vmatprep.subr.bf16.mxu0 %v5961_v10  ;;  %v4752_v10 = vld [vmem:[#allocation11 + $0x90] ss:$24 sps:$4 sm:$0xff]  }
 0x72b   :  { %3366 = vmatpush1.bf16.msra.mxu0 %v5966_v22  ;;  %v4755_v22 = vld [vmem:[#allocation11 + $0xc0] ss:$24 sps:$4 sm:$0xff]  }
 0x72c   :  { %3367 = vmatprep.subr.bf16.mxu0 %v5969_v34  ;;  %v4757_v34 = vld [vmem:[#allocation11 + $0xc4] ss:$24 sps:$4 sm:$0xff]  }
 0x72f   :  { %3368 = vmatpush1.bf16.msra.mxu0 %v5974_v45  ;;  %v4760_v45 = vld [vmem:[#allocation11 + $0xf4] ss:$24 sps:$4 sm:$0xff]  }
 0x730   :  { %3369 = vmatprep.subr.bf16.mxu0 %v5977_v28  ;;  %v4758_v28 = vld [vmem:[#allocation11 + $0xf0] ss:$24 sps:$4 sm:$0xff]  }
 0x733   :  { %3370 = vmatpush1.bf16.msra.mxu0 %v5982_v14  ;;  %v4763_v14 = vld [vmem:[#allocation11 + $0x124] ss:$24 sps:$4 sm:$0xff]  }
 0x734   :  { %3755 = vmatprep.subr.bf16.mxu0 %v4739_v59 }
 0x736   :  { %3388 = vmatmul.mubr.bf16.vlgmr.msra.gmra.mrb[64].mxu0 %v2984_v24  ;;  %v6538_v24 = vsel %vm5460_vm6, %v6536_v49, %v6537_v53  ;;  %v6547_v53 = vld [vmem:[#allocation64_spill] sm:$0xff] }
 0x737   :  { %3756 = vmatpush1.bf16.msra.mxu0 %v4737_v62  ;;  %3787 = vmatprep.mubr.bf16.mxu0 %v6442_v25 }
 0x738   :  { %3757 = vmatprep.subr.bf16.mxu0 %v4742_v57 }
 0x73b   :  { %3758 = vmatpush1.bf16.msra.mxu0 %v4740_v63 }
 0x73c   :  { %3759 = vmatprep.subr.bf16.mxu0 %v5828_v35  ;;  %v6527_v35 = vld [vmem:[#allocation80_spill] sm:$0xff] }
 0x73f   :  { %3760 = vmatpush1.bf16.msra.mxu0 %v5831_v43  ;;  %v6528_v43 = vld [vmem:[#allocation24_spill] sm:$0xff] }
 0x740   :  { %3761 = vmatprep.subr.bf16.mxu0 %v5840_v50  ;;  %v6145_v60 = vpack.c.bf16 %v6528_v43, %v6527_v35  ;;  %v4745_v50 = vld [vmem:[#allocation11 + $0x4] ss:$24 sps:$4 sm:$0xff]  }
 0x741   :  { %3714 = vmatprep.subr.bf16.mxu1 %v4745_v50 }
 0x743   :  { %3762 = vmatpush1.bf16.msra.mxu0 %v5843_v3  ;;  %v4743_v3 = vld [vmem:[#allocation11] ss:$24 sps:$4 sm:$0xff]  }
 0x744   :  { %3763 = vmatprep.subr.bf16.mxu0 %v5854_v11  ;;  %3715 = vmatpush1.bf16.msra.mxu1 %v4743_v3  ;;  %v4748_v11 = vld [vmem:[#allocation11 + $0x34] ss:$24 sps:$4 sm:$0xff]  }
 0x745   :  { %3716 = vmatprep.subr.bf16.mxu1 %v4748_v11 }
 0x747   :  { %3764 = vmatpush1.bf16.msra.mxu0 %v6510_v29  ;;  %v4761_v29 = vld [vmem:[#allocation11 + $0x120] ss:$24 sps:$4 sm:$0xff]  }
 0x748   :  { %3765 = vmatprep.subr.bf16.mxu0 %v6511_v27  ;;  %3717 = vmatpush1.bf16.msra.mxu1 %v4746_v0  ;;  %v4766_v27 = vld [vmem:[#allocation11 + $0x154] ss:$24 sps:$4 sm:$0xff]   ;;  %v4767_v0 = vld [vmem:[#allocation11 + $0x10] ss:$24 sps:$4 sm:$0xff]  }
 0x749   :  { %3718 = vmatprep.subr.bf16.mxu1 %v4751_v30 }
 0x74b   :  { %3766 = vmatpush1.bf16.msra.mxu0 %v6512_v54  ;;  %v4764_v54 = vld [vmem:[#allocation11 + $0x150] ss:$24 sps:$4 sm:$0xff]  }
 0x74c   :  { %3767 = vmatprep.subr.bf16.mxu0 %v6513_v32  ;;  %3719 = vmatpush1.bf16.msra.mxu1 %v4749_v38  ;;  %v4769_v32 = vld [vmem:[#allocation11 + $0x14] ss:$24 sps:$4 sm:$0xff]   ;;  %v4772_v38 = vld [vmem:[#allocation11 + $0x44] ss:$24 sps:$4 sm:$0xff]  }
 0x74d   :  { %3720 = vmatprep.subr.bf16.mxu1 %v4754_v17  ;;  %v6539_v17 = vld [vmem:[#allocation23_spill] sm:$0xff] }
 0x74f   :  { %3768 = vmatpush1.bf16.msra.mxu0 %v6514_v47 }
 0x750   :  { %3769 = vmatprep.subr.bf16.mxu0 %v6515_v9  ;;  %3721 = vmatpush1.bf16.msra.mxu1 %v4752_v10  ;;  %v4489_v10 = vpack.c.bf16 %v5923_v58, %v6539_v17  ;;  %v4776_v58 = vld [vmem:[#allocation11 + $0xa0] ss:$24 sps:$4 sm:$0xff]  }
 0x751   :  { %3722 = vmatprep.subr.bf16.mxu1 %v4757_v34  ;;  %v4775_v34 = vld [vmem:[#allocation11 + $0x74] ss:$24 sps:$4 sm:$0xff]   ;;  %v3957_v17 = vld [vmem:[%s6266_s6] sm:$0x3] }
 0x753   :  { %3770 = vmatpush1.bf16.msra.mxu0 %v6516_v2 }
 0x754   :  { %4486 = vmatprep.subr.bf16.mxu0 %v6145_v60  ;;  %3723 = vmatpush1.bf16.msra.mxu1 %v4755_v22  ;;  %v4770_v22 = vld [vmem:[#allocation11 + $0x40] ss:$24 sps:$4 sm:$0xff]  }
 0x755   :  { %3724 = vmatprep.subr.bf16.mxu1 %v4760_v45  ;;  %v4493_v45 = vpack.c.bf16 %v6110_v39, %v6031_v55  ;;  %v4785_v55 = vld [vmem:[#allocation11 + $0x130] ss:$24 sps:$4 sm:$0xff]  }
 0x758   :  { %3725 = vmatpush1.bf16.msra.mxu1 %v4758_v28  ;;  %v4773_v28 = vld [vmem:[#allocation11 + $0x70] ss:$24 sps:$4 sm:$0xff]  }
 0x759   :  { %3726 = vmatprep.subr.bf16.mxu1 %v4763_v14  ;;  %v4778_v14 = vld [vmem:[#allocation11 + $0xa4] ss:$24 sps:$4 sm:$0xff]  }
 0x75c   :  { %3727 = vmatpush1.bf16.msra.mxu1 %v4761_v29  ;;  %v4779_v29 = vld [vmem:[#allocation11 + $0xd0] ss:$24 sps:$4 sm:$0xff]  }
 0x75d   :  { %3728 = vmatprep.subr.bf16.mxu1 %v4766_v27  ;;  %v4784_v27 = vld [vmem:[#allocation11 + $0x104] ss:$24 sps:$4 sm:$0xff]  }
 0x760   :  { %3729 = vmatpush1.bf16.msra.mxu1 %v4764_v54  ;;  %v4787_v54 = vld [vmem:[#allocation11 + $0x134] ss:$24 sps:$4 sm:$0xff]  }
 0x761   :  { %3796 = vmatprep.subr.bf16.mxu1 %v4769_v32  ;;  %v4788_v32 = vld [vmem:[#allocation11 + $0x160] ss:$24 sps:$4 sm:$0xff]  }
 0x7e9   :  { %v3307_v47 = vpop.f32.mrb[60].mxu0  ;;  %v3348_v9 = vpop.f32.mrb[48].mxu1 }
 0x7ea   :  { %v3309_v2 = vpop.f32.mrb[61].mxu0  ;;  %v3350_v16 = vpop.f32.mrb[49].mxu1 }
 0x7eb   :  { %v3396_v56 = vsel %vm748_vm8, %v3307_v47, %v3350_v16  ;;  %v3311_v46 = vpop.f32.mrb[62].mxu0  ;;  %v3352_v61 = vpop.f32.mrb[50].mxu1  ;;  %v3863_v47 = vld [vmem:[%s6265_s5] sm:$0xff] }
 0x7ec   :  { %v3399_v51 = vadd.f32 %v3396_v56, %v6532_v23  ;;  %v3312_v19 = vpop.f32.mrb[63].mxu0  ;;  %v3353_v21 = vpop.f32.mrb[51].mxu1  ;;  %v6542_v23 = vld [vmem:[#allocation67_spill] sm:$0xff] }
 0x7ee   :  { %v4401_v33 = vmul.f32 -1.442695, %v3399_v51  ;;  %v6543_v51 = vsel %vm5477_vm7, %v6541_v40, %v6542_v23 }
 0x7f0   :  { %4851 = vpow2.f32 %v4401_v33 }
 0x7fa   :  { %v4852_v42 = vpop.eup %4851 }
 0x7fb   :  { %v3403_v6 = vadd.f32 1.0, %v4852_v42 }
 0x7fd   :  { %4853 = vrcp.f32 %v3403_v6 }
 0x807   :  { %v4854_v44 = vpop.eup %4853 }
 0x809   :  { %v3389_v15 = vpop.f32.mrb[64].mxu0 }
 0x80a   :  { %v3397_v48 = vsel %vm748_vm8, %v3309_v2, %v3389_v15  ;;  %v3391_v36 = vpop.f32.mrb[65].mxu0 }
 0x80b   :  { %v3406_v18 = vadd.f32 %v3397_v48, %v6535_v8  ;;  %v3398_v37 = vsel %vm748_vm8, %v3348_v9, %v3391_v36  ;;  %v3393_v41 = vpop.f32.mrb[66].mxu0  ;;  %v6545_v8 = vld [vmem:[#allocation78_spill] sm:$0xff] }
 0x80c   :  { %v3413_v4 = vadd.f32 %v6101_v13, %v3398_v37  ;;  %v3394_v7 = vpop.f32.mrb[67].mxu0 }
 0x80d   :  { %v4402_v12 = vmul.f32 -1.442695, %v3406_v18  ;;  %v6546_v18 = vsel %vm5477_vm7, %v6544_v5, %v6545_v8 }
 0x80e   :  { %v3414_v20 = vmul.f32 %v4854_v44, %v3413_v4 }
 0x80f   :  { %4855 = vpow2.f32 %v4402_v12 }
 0x810   :  { %v3415_v59 = vadd.f32 %v3414_v20, %v6538_v24  ;;  %v6548_v24 = vld [vmem:[#allocation79_spill] sm:$0xff] }
 0x819   :  { %v4856_v62 = vpop.eup %4855 }
 0x81a   :  { %v3410_v57 = vadd.f32 1.0, %v4856_v62 }
 0x81c   :  { %4857 = vrcp.f32 %v3410_v57 }
 0x81d   :  { %4859 = vtanh.f32 %v3415_v59  ;;  %v6549_v59 = vsel %vm5477_vm7, %v6547_v53, %v6548_v24 }
 0x826   :  { %v4858_v63 = vpop.eup %4857 }
 0x827   :  { %v3417_v35 = vsub.f32 1.0, %v4858_v63  ;;  %v4860_v43 = vpop.eup %4859  ;;  %v3419_v3 = vmul.f32 %v4858_v63, %v6110_v39  ;;  %v4790_v39 = vld [vmem:[#allocation11 + $0x164] ss:$24 sps:$4 sm:$0xff]  }
 0x829   :  { %v3418_v50 = vmul.f32 %v4860_v43, %v3417_v35 }
 0x82b   :  { %v6172_v11 = vadd.f32 %v3419_v3, %v3418_v50 }
 0x82d   :  { %v3425_v30 = vpack.c.bf16 %v6172_v11, %v6172_v11 }
 0x82f   :  { %3747 = vmatmul.mubr.bf16.vlgmr.msra.gmra.mrb[52].mxu1 %v3425_v30  ;;  %3788 = vmatmul.mubr.bf16.vlgmr.msra.gmra.mrb[68].mxu0 %v3425_v30 }
 0x830   :  { %3797 = vmatpush1.bf16.msra.mxu1 %v4767_v0  ;;  %4488 = vmatpush3.bf16.msra.mxu0 %v6145_v60  ;;  %v4781_v60 = vld [vmem:[#allocation11 + $0xd4] ss:$24 sps:$4 sm:$0xff]  }
 0x831   :  { %4490 = vmatprep.subr.bf16.mxu0 %v4489_v10  ;;  %3798 = vmatprep.subr.bf16.mxu1 %v4772_v38  ;;  %v3864_v38 = vld [vmem:[%s6265_s5 + $0x8] sm:$0xff] }
 0x832   :  { %3828 = vmatprep.mubr.bf16.mxu1 %v6442_v25  ;;  %v4782_v25 = vld [vmem:[#allocation11 + $0x100] ss:$24 sps:$4 sm:$0xff]   ;;  %4482 = vmatprep.mubr.msk.f32.mxu0 %vm3873_vm9, %v3863_v47 }
 0x834   :  { %3799 = vmatpush1.bf16.msra.mxu1 %v4770_v22  ;;  %4492 = vmatpush3.bf16.msra.mxu0 %v4489_v10  ;;  %v6550_v10 = vsub.s32 1, %v6455_v31 }
 0x835   :  { %4494 = vmatprep.subr.bf16.mxu0 %v4493_v45  ;;  %3800 = vmatprep.subr.bf16.mxu1 %v4775_v34  ;;  %v6551_v34 = vsub.s32 0, %v6455_v31 }
 0x836   :  { %v3966_v22 = vrot.slane %v3957_v17, %v6550_v10 }
 0x838   :  { %3801 = vmatpush1.bf16.msra.mxu1 %v4773_v28  ;;  %4496 = vmatpush3.bf16.msra.mxu0 %v4493_v45  ;;  %v3962_v45 = vrot.slane %v3957_v17, %v6551_v34 }
 0x839   :  { %3802 = vmatprep.subr.bf16.mxu1 %v4778_v14 }
 0x83c   :  { %3803 = vmatpush1.bf16.msra.mxu1 %v4776_v58 }
 0x83d   :  { %3804 = vmatprep.subr.bf16.mxu1 %v4781_v60 }
 0x840   :  { %3805 = vmatpush1.bf16.msra.mxu1 %v4779_v29  ;;  %v4455_v29 = vld [vmem:[#allocation4] ss:$0 sm:$0xff] }
 0x841   :  { %3806 = vmatprep.subr.bf16.mxu1 %v4784_v27 }
 0x844   :  { %3807 = vmatpush1.bf16.msra.mxu1 %v4782_v25 }
 0x845   :  { %3808 = vmatprep.subr.bf16.mxu1 %v4787_v54  ;;  %v3988_v54 = vld [vmem:[%s6268_s8] sm:$0xff] }
 0x848   :  { %3809 = vmatpush1.bf16.msra.mxu1 %v4785_v55 }
 0x849   :  { %3810 = vmatprep.subr.bf16.mxu1 %v4790_v39 }
 0x84c   :  { %3811 = vmatpush1.bf16.msra.mxu1 %v4788_v32 }
 0x84f   :  { %3829 = vmatmul.mubr.bf16.vlgmr.msra.gmra.mrb[56].mxu1 %v3425_v30 }
 0x902   :  { %v3748_v9 = vpop.f32.mrb[52].mxu1  ;;  %v3789_v2 = vpop.f32.mrb[68].mxu0 }
 0x903   :  { %v3750_v16 = vpop.f32.mrb[53].mxu1  ;;  %v3791_v56 = vpop.f32.mrb[69].mxu0 }
 0x904   :  { %v3837_v46 = vsel %vm748_vm8, %v3748_v9, %v3791_v56  ;;  %v3752_v61 = vpop.f32.mrb[54].mxu1  ;;  %v3793_v26 = vpop.f32.mrb[70].mxu0 }
 0x905   :  { %v3840_v19 = vadd.f32 %v3837_v46, %v6543_v51  ;;  %v3753_v21 = vpop.f32.mrb[55].mxu1  ;;  %v3794_v33 = vpop.f32.mrb[71].mxu0 }
 0x907   :  { %v4451_v42 = vmul.f32 -1.442695, %v3840_v19 }
 0x909   :  { %4861 = vpow2.f32 %v4451_v42 }
 0x913   :  { %v4862_v6 = vpop.eup %4861 }
 0x914   :  { %v3844_v15 = vadd.f32 1.0, %v4862_v6 }
 0x916   :  { %4863 = vrcp.f32 %v3844_v15 }
 0x920   :  { %v4864_v12 = vpop.eup %4863 }
 0x922   :  { %v3830_v48 = vpop.f32.mrb[56].mxu1 }
 0x923   :  { %v3838_v36 = vsel %vm748_vm8, %v3750_v16, %v3830_v48  ;;  %v3832_v1 = vpop.f32.mrb[57].mxu1 }
 0x924   :  { %v3847_v37 = vadd.f32 %v3838_v36, %v6546_v18  ;;  %v3839_v41 = vsel %vm748_vm8, %v3789_v2, %v3832_v1  ;;  %v3834_v4 = vpop.f32.mrb[58].mxu1 }
 0x925   :  { %v3854_v7 = vadd.f32 %v6101_v13, %v3839_v41  ;;  %v3835_v44 = vpop.f32.mrb[59].mxu1 }
 0x926   :  { %v4452_v20 = vmul.f32 -1.442695, %v3847_v37 }
 0x927   :  { %v3855_v49 = vmul.f32 %v4864_v12, %v3854_v7 }
 0x928   :  { %4865 = vpow2.f32 %v4452_v20 }
 0x929   :  { %v3856_v62 = vadd.f32 %v3855_v49, %v6549_v59 }
 0x932   :  { %v4866_v57 = vpop.eup %4865 }
 0x933   :  { %v3851_v63 = vadd.f32 1.0, %v4866_v57 }
 0x935   :  { %4867 = vrcp.f32 %v3851_v63 }
 0x936   :  { %4869 = vtanh.f32 %v3856_v62 }
 0x93f   :  { %v4868_v35 = vpop.eup %4867 }
 0x940   :  { %v3858_v43 = vsub.f32 1.0, %v4868_v35  ;;  %v4870_v50 = vpop.eup %4869  ;;  %v3860_v13 = vmul.f32 %v4868_v35, %v6172_v11 }
 0x942   :  { %v3859_v3 = vmul.f32 %v4870_v50, %v3858_v43 }
 0x944   :  { %v3861_v0 = vadd.f32 %v3860_v13, %v3859_v3 }
 0x946   :  { %v4497_v30 = vpack.c.bf16 %v3861_v0, %v6172_v11 }
 0x948   :  { %4498 = vmatprep.subr.bf16.mxu0 %v4497_v30 }
 0x949   :  { %4500 = vmatpush3.bf16.msra.mxu0 %v4497_v30 }
 0x94c   :  { %4483 = vmatmul.mubr.msk.f32.vlgmr.msra.gmra.mrb[72].mxu0 %vm3873_vm9, %v3864_v38 }
 0xa1f   :  { %v4484_v28 = vpop.f32.mrb[72].mxu0 }
 0xa20   :  { %3956 = vst [vmem:[#allocation14 + $0x8] sm:$0xff] %v4484_v28  ;;  %v3970_v11 = vmul.f32 %v4484_v28, %v3966_v22  ;;  %v3946_v14 = vpop.f32.mrb[73].mxu0 }
 0xa21   :  { %3955 = vst [vmem:[#allocation14] sm:$0xff] %v3946_v14  ;;  %v3969_v58 = vmul.f32 %v3962_v45, %v3946_v14 }
 0xa23   :  { %v3971_v60 = vadd.f32 %v3970_v11, %v3969_v58 }
 0xa25   :  { %3972 = vadd.xlane.f32.xlu0 %v3971_v60 }
 0xab2   :  { %v3973_v27 = vpop.xlane.xlu0 %3972 }
 0xab3   :  { %v3981_v25 = vadd.f32 %v4455_v29, %v3973_v27 }
 0xab5   :  { %3984 = vperm.xlu0 %4516, %v3981_v25  }
 0xb34   :  { %v3985_v55 = vpop.permute.xlu0 %3984 }
 0xb35   :  { %3987 = vst [vmem:[#allocation15] sm:$0xff] %v3985_v55  ;;  %v3989_v31 = vsub.f32 %v3985_v55, %v3988_v54 }
 0xb37   :  { %v3990_v39 = vmul.f32 %v3989_v31, %v3989_v31 }
 0xb39   :  { %3991 = vadd.xlane.f32.xlu1 %v3990_v39 }
 0xb3a   :  { %4993 = shalt.err (!%p4990_p2)
}
 0xb3b   :  { %s4994_s8 = scalar_lea.hbm %s6270_s10, 128 }
 0xb3c   :  { %p4995_p3 = scmp.ne.s32.totalorder %s6270_s10, %s4994_s8  ;;  %p4998_p4 = scmp.lt.u32.totalorder %s4994_s8, %s6270_s10 }
 0xb3e   :  { %p5000_p5 = pnand %p4998_p4, %p4995_p3 }
 0xb40   :  { %5003 = shalt.err (!%p5000_p5)
}
 0xb41   :  { %4024 = dma.vmem_to_hbm [thread:$0]  %s4022_s1, 128, %s6270_s10, [#allocation16]  }
 0xb42   :  { %s5004_s17 = scalar_lea.vmem %s4012_s25, 256  ;;  %p5009_p7 = scmp.lt.s32.totalorder %s4012_s25, %s4012_s25 }
 0xb43   :  { %p5005_p6 = scmp.ne.s32.totalorder %s4012_s25, %s5004_s17  ;;  %p5010_p8 = scmp.lt.s32.totalorder %s5004_s17, %s5004_s17 }
 0xb45   :  { %p5011_p9 = por %p5010_p8, %p5009_p7 }
 0xb47   :  { %p5012_p10 = pnand %p5011_p9, %p5005_p6 }
 0xb49   :  { %5015 = shalt.err (!%p5012_p10)
}
 0xb4a   :  { %s5016_s29 = scalar_lea.hbm %s6269_s9, 256 }
 0xb4b   :  { %p5017_p11 = scmp.ne.s32.totalorder %s6269_s9, %s5016_s29  ;;  %p5020_p12 = scmp.lt.u32.totalorder %s5016_s29, %s6269_s9 }
 0xb4d   :  { %p5022_p13 = pnand %p5020_p12, %p5017_p11 }
 0xb4f   :  { %5025 = shalt.err (!%p5022_p13)
}
 0xb50   :  { %4014 = dma.vmem_to_hbm [thread:$0]  %s4012_s25, 256, %s6269_s9, [#allocation7]  }
 0xb51   :  { %s5070_s21 = smov [#allocation17]  }
 0xb52   :  { %s4031_s22 = sshll.u32 %s5070_s21, 4  ;;  %s4032_s22 = int_to_ptr.vmem [resolvable:$true] %s4031_s22 }
 0xb53   :  { %s5026_s6 = scalar_lea.vmem %s4032_s22, 128  ;;  %p5031_p1 = scmp.lt.s32.totalorder %s4032_s22, %s4032_s22 }
 0xb54   :  { %p5027_p0 = scmp.ne.s32.totalorder %s4032_s22, %s5026_s6  ;;  %p5032_p2 = scmp.lt.s32.totalorder %s5026_s6, %s5026_s6 }
 0xb56   :  { %p5033_p3 = por %p5032_p2, %p5031_p1 }
 0xb58   :  { %p5034_p4 = pnand %p5033_p3, %p5027_p0 }
 0xbc6   :  { %v3992_v32 = vpop.xlane.xlu1 %3991 }
 0xbc7   :  { %v3993_v47 = vrot.slane %v3992_v32, 4 }
 0xbc9   :  { %v3994_v9 = vadd.f32 %v3993_v47, %v3992_v32 }
 0xbcb   :  { %v3995_v2 = vrot.slane %v3994_v9, 2 }
 0xbcd   :  { %v3996_v16 = vadd.f32 %v3995_v2, %v3994_v9 }
 0xbcf   :  { %v3997_v56 = vrot.slane %v3996_v16, 1 }
 0xbd1   :  { %v3998_v46 = vadd.f32 %v3997_v56, %v3996_v16 }
 0xbd3   :  { %4501 = vpush %v3998_v46 }
 0xc04   :  { %s4502_s23 = spop %4501 }
 0xc05   :  { %s4002_s5 = smul.f32 0.0009765625, %s4502_s23 }
 0xc07   :  { %v4003_v61 = vstv %s4002_s5 }
 0xc08   :  { %4004 = vst [vmem:[#allocation17] sm:$0xff] %v4003_v61 }
 0xc09   :  { %5037 = shalt.err (!%p5034_p4)
}
 0xc0a   :  { %s5038_s1 = scalar_lea.hbm %s6271_s11, 128 }
 0xc0b   :  { %p5039_p5 = scmp.ne.s32.totalorder %s6271_s11, %s5038_s1  ;;  %p5042_p6 = scmp.lt.u32.totalorder %s5038_s1, %s6271_s11 }
 0xc0d   :  { %p5044_p7 = pnand %p5042_p6, %p5039_p5 }
 0xc0f   :  { %5047 = shalt.err (!%p5044_p7)
}
 0xc10   :  { %4034 = dma.vmem_to_hbm [thread:$0]  %s4032_s22, 128, %s6271_s11, [#allocation16]  }
 0xc11   :  { %5054 = dma.done.wait [#allocation7], 256  }
 0xc12   :  { %5055 = vsyncadd [#allocation7], 4294967040 }
 0xc13   :  { %5056 = dma.done.wait [#allocation16], 256  }
 0xc14   :  { %5057 = vsyncadd [#allocation16], 4294967040 }
 0xc15   :  { %4044 = vsyncpa [#allocation6], 1 }
 0xc16   :  { %4045 = vsyncpa [#allocation9], 1 }
 0xc17   :  { %4046 = vsyncpa [#allocation12], 1 }
 0xc18   :  { %4047 = vsyncpa [#allocation7], 1 }
 0xc19   :  { %4048 = vsyncpa [#allocation16], 1 }

</bundles_post_ra>
